<compile_context>
chip_gen: v7x
topology: tpu7x:2x2x1
jax: 0.10.0
libtpu: 0.0.40
codegen_flags: <defaults>
</compile_context>

<pallas_src>
import math

import jax
import jax.numpy as jnp
from jax.experimental import pallas as pl
from jax.experimental.pallas import tpu as pltpu


def _round_up(x, m):
    return ((x + m - 1) // m) * m


def _cdiv(a, b):
    return -(-a // b)


def dqn_mlp_kernel(x_ref, w1_ref, b1_ref, w2_ref, b2_ref, w3_ref, b3_ref, out_ref):
    # Single cast: raw observation tile (uint8 / bf16 / f32) -> bf16 for the MXU.
    x = x_ref[...].astype(jnp.bfloat16)                                # (TB, D)

    # Layer 1: Linear(D, 512) + ReLU   (bf16 operands, f32 accumulation)
    h1 = jnp.dot(x, w1_ref[...], preferred_element_type=jnp.float32) + b1_ref[...]
    h1 = jnp.maximum(h1, 0.0)

    # Layer 2: Linear(512, 256) + ReLU
    h2 = jnp.dot(h1.astype(jnp.bfloat16), w2_ref[...],
                 preferred_element_type=jnp.float32) + b2_ref[...]
    h2 = jnp.maximum(h2, 0.0)

    # Layer 3: Linear(256, n_actions_padded); padded columns carry zero W/b.
    out = jnp.dot(h2.astype(jnp.bfloat16), w3_ref[...],
                  preferred_element_type=jnp.float32) + b3_ref[...]
    out_ref[...] = out.astype(out_ref.dtype)


def dqn_forward(x_nchw, params):
    """x_nchw: (B, C, H, W), any real dtype (uint8 / bf16 / f32).
    Returns (B, n_actions) float32."""
    w1, b1, w2, b2, w3, b3 = params
    B = x_nchw.shape[0]
    D = math.prod(x_nchw.shape[1:])
    n_actions = w3.shape[1]
    n_pad = _round_up(n_actions, 128)  # lane-dense output / full MXU result columns

    # Row-major flatten, identical to torch's x.flatten(start_dim=1). Cast is in-kernel,
    # so callers can (and for large batches on v6e/v7x should) pass uint8 observations.
    x_flat = x_nchw.reshape(B, D)

    # bf16 weight stream (f32 accumulation in the kernel keeps accuracy).
    w1b = w1.astype(jnp.bfloat16)
    w2b = w2.astype(jnp.bfloat16)
    w3b = jnp.pad(w3.astype(jnp.bfloat16), ((0, 0), (0, n_pad - n_actions)))
    # Biases stay f32 (tiny) and broadcast as (1, N) rows.
    b1r = b1.astype(jnp.float32).reshape(1, -1)
    b2r = b2.astype(jnp.float32).reshape(1, -1)
    b3r = jnp.pad(b3.astype(jnp.float32), (0, n_pad - n_actions)).reshape(1, -1)

    # Batch tile: multiple of the sublane packing for the input dtype, capped at 512
    # (double-buffered x tiles + resident weights + activations stay inside v5e's
    # 16 MiB default scoped VMEM; v6e/v7x have more headroom).
    itemsize = jnp.dtype(x_flat.dtype).itemsize
    sublane = {4: 8, 2: 16, 1: 32}.get(itemsize, 8)
    tb = min(512, _round_up(B, sublane))
    # Prefer >= 2 batch tiles so the "parallel" axis can shard across both TCs on v7x.
    if tb >= B and B >= 2 * sublane:
        tb = _round_up(_cdiv(B, 2), sublane)
    grid = (_cdiv(B, tb),)  # partial last tile handled (masked) by Pallas; no jnp.pad

    const = lambda i: (0, 0)  # weights/biases: same block every tile -> VMEM-resident

    out = pl.pallas_call(
        dqn_mlp_kernel,
        out_shape=jax.ShapeDtypeStruct((B, n_pad), jnp.float32),
        grid=grid,
        in_specs=[
            pl.BlockSpec((tb, D), lambda i: (i, 0)),          # x tile, pipelined over batch
            pl.BlockSpec(w1b.shape, const),
            pl.BlockSpec((1, b1r.shape[1]), const),
            pl.BlockSpec(w2b.shape, const),
            pl.BlockSpec((1, b2r.shape[1]), const),
            pl.BlockSpec(w3b.shape, const),
            pl.BlockSpec((1, b3r.shape[1]), const),
        ],
        out_specs=pl.BlockSpec((tb, n_pad), lambda i: (i, 0)),
        compiler_params=pltpu.CompilerParams(
            dimension_semantics=("parallel",),                # shards tiles across TCs on v7x
        ),
    )(x_flat, w1b, b1r, w2b, b2r, w3b, b3r)

    return out[:, :n_actions] if n_pad != n_actions else out


def init_params(key, flat_dim, n_actions):
    """Deterministic synthetic parameters (shapes match the nn.Linear layers)."""
    ks = jax.random.split(key, 6)

    def lin(kw, kb, fan_in, fan_out):
        bound = 1.0 / math.sqrt(fan_in)
        w = jax.random.uniform(kw, (fan_in, fan_out), jnp.float32, -bound, bound)
        b = jax.random.uniform(kb, (fan_out,), jnp.float32, -bound, bound)
        return w, b

    w1, b1 = lin(ks[0], ks[1], flat_dim, 512)
    w2, b2 = lin(ks[2], ks[3], 512, 256)
    w3, b3 = lin(ks[4], ks[5], 256, n_actions)
    return (w1, b1, w2, b2, w3, b3)


def _reference_forward(x_nchw, params):
    """Pure-JAX reference using the same bf16-operand / f32-accumulate math."""
    w1, b1, w2, b2, w3, b3 = params
    B = x_nchw.shape[0]
    D = math.prod(x_nchw.shape[1:])
    x = x_nchw.reshape(B, D)

    def lin(a, w, b):
        return jnp.dot(a.astype(jnp.bfloat16), w.astype(jnp.bfloat16),
                       preferred_element_type=jnp.float32) + b.astype(jnp.float32)

    h1 = jnp.maximum(lin(x, w1, b1), 0.0)
    h2 = jnp.maximum(lin(h1, w2, b2), 0.0)
    return lin(h2, w3, b3)


if __name__ == "__main__":
    key = jax.random.PRNGKey(0)
    k_x, k_p = jax.random.split(key)

    # Small shapes consistent with the module: obs_shape=(4, 16, 16), batch=2.
    B, C, H, W = 2, 4, 16, 16
    n_actions = 8
    flat_dim = C * H * W  # 1024

    x = jax.random.normal(k_x, (B, C, H, W), jnp.float32)
    params = init_params(k_p, flat_dim, n_actions)

    out = dqn_forward(x, params)
    out = jax.block_until_ready(out)

    ref = _reference_forward(x, params)
    assert out.shape == (B, n_actions)
    assert jnp.all(jnp.isfinite(out))
    assert jnp.allclose(out, ref, atol=1e-3, rtol=1e-3)

    # TODO(synk): for steady-state act() loops with tiny B, keep the ~1.3 MiB of bf16
    # weights VMEM-resident across calls (P10 cross-call prefetch: a setup pallas_call
    # DMAs weights once and returns sem + VMEM refs consumed by this forward kernel),
    # so small-batch inference isn't dominated by the per-call weight DMA.

    print("KERNEL_OK")
</pallas_src>

<mosaic_0001>
module attributes {stable_mosaic.version = 11 : i64} {
  func.func @dqn_mlp_kernel(%arg0: i32, %arg1: memref<8x1024xf32, #tpu.memory_space<vmem>>, %arg2: memref<1024x512xbf16, #tpu.memory_space<vmem>>, %arg3: memref<1x512xf32, #tpu.memory_space<vmem>>, %arg4: memref<512x256xbf16, #tpu.memory_space<vmem>>, %arg5: memref<1x256xf32, #tpu.memory_space<vmem>>, %arg6: memref<256x128xbf16, #tpu.memory_space<vmem>>, %arg7: memref<1x128xf32, #tpu.memory_space<vmem>>, %arg8: memref<8x128xf32, #tpu.memory_space<vmem>>) attributes {dimension_semantics = [#tpu.dimension_semantics<parallel>], iteration_bounds = array<i64: 1>, scalar_prefetch = 0 : i64, scratch_operands = 0 : i64, tpu.core_type = #tpu.core_type<tc>, window_params = [{transform_indices = @transform_0, window_bounds = array<i64: 8, 1024>}, {pipeline_mode = #tpu.pipeline_mode<synchronous>, transform_indices = @transform_1, window_bounds = array<i64: 1024, 512>}, {pipeline_mode = #tpu.pipeline_mode<synchronous>, transform_indices = @transform_2, window_bounds = array<i64: 1, 512>}, {pipeline_mode = #tpu.pipeline_mode<synchronous>, transform_indices = @transform_3, window_bounds = array<i64: 512, 256>}, {pipeline_mode = #tpu.pipeline_mode<synchronous>, transform_indices = @transform_4, window_bounds = array<i64: 1, 256>}, {pipeline_mode = #tpu.pipeline_mode<synchronous>, transform_indices = @transform_5, window_bounds = array<i64: 256, 128>}, {pipeline_mode = #tpu.pipeline_mode<synchronous>, transform_indices = @transform_6, window_bounds = array<i64: 1, 128>}, {transform_indices = @transform_7, window_bounds = array<i64: 8, 128>}]} {
    %c0 = arith.constant 0 : index
    %c0_0 = arith.constant 0 : index
    %0 = vector.load %arg1[%c0, %c0_0] : memref<8x1024xf32, #tpu.memory_space<vmem>>, vector<8x1024xf32>
    %1 = arith.truncf %0 : vector<8x1024xf32> to vector<8x1024xbf16>
    %c0_1 = arith.constant 0 : index
    %c0_2 = arith.constant 0 : index
    %2 = vector.load %arg2[%c0_1, %c0_2] : memref<1024x512xbf16, #tpu.memory_space<vmem>>, vector<1024x512xbf16>
    %cst = arith.constant dense<0.000000e+00> : vector<8x512xf32>
    %3 = tpu.matmul %1, %2, %cst {dimension_numbers = #tpu.dot_dimension_numbers<[1], [0], [0], [1], [0, 0, 1, 1], [], []>} : vector<8x1024xbf16>, vector<1024x512xbf16>, vector<8x512xf32> -> vector<8x512xf32>
    %c0_3 = arith.constant 0 : index
    %c0_4 = arith.constant 0 : index
    %4 = vector.load %arg3[%c0_3, %c0_4] : memref<1x512xf32, #tpu.memory_space<vmem>>, vector<1x512xf32>
    %5 = vector.broadcast %4 : vector<1x512xf32> to vector<8x512xf32>
    %6 = arith.addf %3, %5 : vector<8x512xf32>
    %cst_5 = arith.constant 0.000000e+00 : f32
    %7 = vector.broadcast %cst_5 : f32 to vector<8x512xf32>
    %8 = arith.maximumf %6, %7 : vector<8x512xf32>
    %9 = arith.truncf %8 : vector<8x512xf32> to vector<8x512xbf16>
    %c0_6 = arith.constant 0 : index
    %c0_7 = arith.constant 0 : index
    %10 = vector.load %arg4[%c0_6, %c0_7] : memref<512x256xbf16, #tpu.memory_space<vmem>>, vector<512x256xbf16>
    %cst_8 = arith.constant dense<0.000000e+00> : vector<8x256xf32>
    %11 = tpu.matmul %9, %10, %cst_8 {dimension_numbers = #tpu.dot_dimension_numbers<[1], [0], [0], [1], [0, 0, 1, 1], [], []>} : vector<8x512xbf16>, vector<512x256xbf16>, vector<8x256xf32> -> vector<8x256xf32>
    %c0_9 = arith.constant 0 : index
    %c0_10 = arith.constant 0 : index
    %12 = vector.load %arg5[%c0_9, %c0_10] : memref<1x256xf32, #tpu.memory_space<vmem>>, vector<1x256xf32>
    %13 = vector.broadcast %12 : vector<1x256xf32> to vector<8x256xf32>
    %14 = arith.addf %11, %13 : vector<8x256xf32>
    %cst_11 = arith.constant 0.000000e+00 : f32
    %15 = vector.broadcast %cst_11 : f32 to vector<8x256xf32>
    %16 = arith.maximumf %14, %15 : vector<8x256xf32>
    %17 = arith.truncf %16 : vector<8x256xf32> to vector<8x256xbf16>
    %c0_12 = arith.constant 0 : index
    %c0_13 = arith.constant 0 : index
    %18 = vector.load %arg6[%c0_12, %c0_13] : memref<256x128xbf16, #tpu.memory_space<vmem>>, vector<256x128xbf16>
    %cst_14 = arith.constant dense<0.000000e+00> : vector<8x128xf32>
    %19 = tpu.matmul %17, %18, %cst_14 {dimension_numbers = #tpu.dot_dimension_numbers<[1], [0], [0], [1], [0, 0, 1, 1], [], []>} : vector<8x256xbf16>, vector<256x128xbf16>, vector<8x128xf32> -> vector<8x128xf32>
    %c0_15 = arith.constant 0 : index
    %c0_16 = arith.constant 0 : index
    %20 = vector.load %arg7[%c0_15, %c0_16] : memref<1x128xf32, #tpu.memory_space<vmem>>, vector<1x128xf32>
    %21 = vector.broadcast %20 : vector<1x128xf32> to vector<8x128xf32>
    %22 = arith.addf %19, %21 : vector<8x128xf32>
    %c0_17 = arith.constant 0 : index
    %c0_18 = arith.constant 0 : index
    %23 = vector.load %arg8[%c0_17, %c0_18] : memref<8x128xf32, #tpu.memory_space<vmem>>, vector<8x128xf32>
    tpu.vector_store %arg8[%c0_17, %c0_18], %22 {strides = array<i32>} : memref<8x128xf32, #tpu.memory_space<vmem>>, vector<8x128xf32>,
    return
  }
  func.func @transform_0(%arg0: i32) -> (i32, i32) {
    %c0_i32 = arith.constant 0 : i32
    %c0_i32_0 = arith.constant 0 : i32
    return %arg0, %c0_i32 : i32, i32
  }
  func.func @transform_1(%arg0: i32) -> (i32, i32) {
    %c0_i32 = arith.constant 0 : i32
    %c0_i32_0 = arith.constant 0 : i32
    %c0_i32_1 = arith.constant 0 : i32
    return %c0_i32, %c0_i32_0 : i32, i32
  }
  func.func @transform_2(%arg0: i32) -> (i32, i32) {
    %c0_i32 = arith.constant 0 : i32
    %c0_i32_0 = arith.constant 0 : i32
    %c0_i32_1 = arith.constant 0 : i32
    return %c0_i32, %c0_i32_0 : i32, i32
  }
  func.func @transform_3(%arg0: i32) -> (i32, i32) {
    %c0_i32 = arith.constant 0 : i32
    %c0_i32_0 = arith.constant 0 : i32
    %c0_i32_1 = arith.constant 0 : i32
    return %c0_i32, %c0_i32_0 : i32, i32
  }
  func.func @transform_4(%arg0: i32) -> (i32, i32) {
    %c0_i32 = arith.constant 0 : i32
    %c0_i32_0 = arith.constant 0 : i32
    %c0_i32_1 = arith.constant 0 : i32
    return %c0_i32, %c0_i32_0 : i32, i32
  }
  func.func @transform_5(%arg0: i32) -> (i32, i32) {
    %c0_i32 = arith.constant 0 : i32
    %c0_i32_0 = arith.constant 0 : i32
    %c0_i32_1 = arith.constant 0 : i32
    return %c0_i32, %c0_i32_0 : i32, i32
  }
  func.func @transform_6(%arg0: i32) -> (i32, i32) {
    %c0_i32 = arith.constant 0 : i32
    %c0_i32_0 = arith.constant 0 : i32
    %c0_i32_1 = arith.constant 0 : i32
    return %c0_i32, %c0_i32_0 : i32, i32
  }
  func.func @transform_7(%arg0: i32) -> (i32, i32) {
    %c0_i32 = arith.constant 0 : i32
    %c0_i32_0 = arith.constant 0 : i32
    return %arg0, %c0_i32 : i32, i32
  }
}

</mosaic_0001>

<bundles_post_ra>
// kernel: tpu_custom_call.1
= control target key start
LH: loop header
LB: loop body
LE: loop exit
PB: predicated region body
PF: predicated region fallthrough
CT: control target
= control target key end

     0   :  { %12 = vsyncpa [#allocation3], 0  ;;  %s3995_s0 = inlined_call_operand.hbm [shape: f32[2,1024], index: 0, kind: input, shape index: {}]   ;;  %s3996_s1 = inlined_call_operand.hbm [shape: bf16[1024,512], index: 1, kind: input, shape index: {}]   ;;  %s3997_s2 = inlined_call_operand.vmem [shape: f32[1,512], index: 2, kind: input, shape index: {}]   ;;  %s3998_s3 = inlined_call_operand.hbm [shape: bf16[512,256], index: 3, kind: input, shape index: {}]   ;;  %s3999_s4 = inlined_call_operand.vmem [shape: f32[1,256], index: 4, kind: input, shape index: {}]   ;;  %s4000_s5 = inlined_call_operand.hbm [shape: bf16[256,128], index: 5, kind: input, shape index: {}]   ;;  %s4001_s6 = inlined_call_operand.vmem [shape: f32[1,128], index: 6, kind: input, shape index: {}]   ;;  %s4002_s7 = inlined_call_operand.hbm [shape: f32[2,128], index: 7, kind: output, shape index: {}]  }
   0x1   :  { %13 = vsyncpa [#allocation6], 0 }
   0x2   :  { %14 = vsyncpa [#allocation9], 0 }
   0x3   :  { %15 = vsyncpa [#allocation4], 0 }
   0x4   :  { %20 = vsyncadd [#allocation3], 768  ;;  %s3789_s24 = smov [#allocation5]   ;;  %s3790_s26 = smov [#allocation2]  }
   0x5   :  { %s33_s25 = sshll.u32 %s3789_s24, 4  ;;  %s21_s27 = sshll.u32 %s3790_s26, 4  ;;  %s34_s25 = int_to_ptr.vmem [resolvable:$true] %s33_s25  ;;  %s3843_s27 = int_to_ptr.vmem [resolvable:$true] %s21_s27 }
   0x6   :  { %s3671_s30 = scalar_lea.hbm %s3996_s1, 32768 }
   0x7   :  { %p3672_p0 = scmp.ne.s32.totalorder %s3996_s1, %s3671_s30  ;;  %p3675_p1 = scmp.lt.u32.totalorder %s3671_s30, %s3996_s1 }
   0x9   :  { %p3677_p2 = pnand %p3675_p1, %p3672_p0 }
   0xb   :  { %3680 = shalt.err (!%p3677_p2)
}
   0xc   :  { %s3681_s12 = scalar_lea.vmem %s34_s25, 32768  ;;  %p3686_p4 = scmp.lt.s32.totalorder %s34_s25, %s34_s25 }
   0xd   :  { %p3682_p3 = scmp.ne.s32.totalorder %s34_s25, %s3681_s12  ;;  %p3687_p5 = scmp.lt.s32.totalorder %s3681_s12, %s3681_s12 }
   0xf   :  { %p3688_p6 = por %p3687_p5, %p3686_p4 }
  0x11   :  { %p3689_p7 = pnand %p3688_p6, %p3682_p3 }
  0x13   :  { %3692 = shalt.err (!%p3689_p7)
}
  0x14   :  { %s3791_s13 = smov 256   ;;  %s3792_s14 = smov 16  }
  0x15   :  { %39 = dma.hbm_to_vmem [thread:$0]  %s3996_s1, 32768, %s34_s25, [#allocation6], %s3791_s13, %s3791_s13, %s3792_s14  }
  0x16   :  { %s3693_s19 = scalar_lea.hbm %s3995_s0, 256 }
  0x17   :  { %p3694_p8 = scmp.ne.s32.totalorder %s3995_s0, %s3693_s19  ;;  %p3697_p9 = scmp.lt.u32.totalorder %s3693_s19, %s3995_s0 }
  0x19   :  { %p3699_p10 = pnand %p3697_p9, %p3694_p8 }
  0x1b   :  { %3702 = shalt.err (!%p3699_p10)
}
  0x1c   :  { %s3703_s24 = scalar_lea.vmem %s3843_s27, 256  ;;  %s3707_s1 = scalar_lea.vmem %s3843_s27, 1024 }
  0x1d   :  { %p3704_p11 = scmp.ne.s32.totalorder %s3843_s27, %s3703_s24  ;;  %p3708_p12 = scmp.lt.s32.totalorder %s3843_s27, %s3843_s27 }
  0x1e   :  { %p3709_p13 = scmp.lt.s32.totalorder %s3707_s1, %s3703_s24 }
  0x20   :  { %p3710_p0 = por %p3709_p13, %p3708_p12 }
  0x22   :  { %p3711_p1 = pnand %p3710_p0, %p3704_p11 }
  0x24   :  { %3714 = shalt.err (!%p3711_p1)
}
  0x25   :  { %27 = dma.hbm_to_vmem [thread:$0]  %s3995_s0, 256, %s3843_s27, [#allocation3], %s3791_s13, %s3791_s13, %s3792_s14  }
  0x26   :  { %s3793_s28 = smov [#allocation7]   ;;  %s3715_s9 = scalar_lea.hbm %s3998_s3, 8192 }
  0x27   :  { %s47_s29 = sshll.u32 %s3793_s28, 4  ;;  %p3716_p2 = scmp.ne.s32.totalorder %s3998_s3, %s3715_s9  ;;  %s48_s29 = int_to_ptr.vmem [resolvable:$true] %s47_s29 }
  0x28   :  { %p3719_p3 = scmp.lt.u32.totalorder %s3715_s9, %s3998_s3 }
  0x2a   :  { %p3721_p4 = pnand %p3719_p3, %p3716_p2 }
  0x2c   :  { %3724 = shalt.err (!%p3721_p4)
}
  0x2d   :  { %s3725_s16 = scalar_lea.vmem %s48_s29, 8192  ;;  %p3730_p6 = scmp.lt.s32.totalorder %s48_s29, %s48_s29 }
  0x2e   :  { %p3726_p5 = scmp.ne.s32.totalorder %s48_s29, %s3725_s16  ;;  %p3731_p7 = scmp.lt.s32.totalorder %s3725_s16, %s3725_s16 }
  0x30   :  { %p3732_p8 = por %p3731_p7, %p3730_p6 }
  0x32   :  { %p3733_p9 = pnand %p3732_p8, %p3726_p5 }
  0x34   :  { %3736 = shalt.err (!%p3733_p9)
}
  0x35   :  { %s3794_s0 = smov 128   ;;  %s3795_s27 = smov 8  }
  0x36   :  { %53 = dma.hbm_to_vmem [thread:$0]  %s3998_s3, 8192, %s48_s29, [#allocation6], %s3794_s0, %s3794_s0, %s3795_s27  }
  0x37   :  { %s3796_s17 = smov [#allocation8]   ;;  %s3737_s21 = scalar_lea.hbm %s4000_s5, 2048 }
  0x38   :  { %s61_s18 = sshll.u32 %s3796_s17, 4  ;;  %p3738_p10 = scmp.ne.s32.totalorder %s4000_s5, %s3737_s21  ;;  %s62_s18 = int_to_ptr.vmem [resolvable:$true] %s61_s18 }
  0x39   :  { %p3741_p11 = scmp.lt.u32.totalorder %s3737_s21, %s4000_s5 }
  0x3b   :  { %p3743_p12 = pnand %p3741_p11, %p3738_p10 }
  0x3d   :  { %3746 = shalt.err (!%p3743_p12)
}
  0x3e   :  { %s3747_s25 = scalar_lea.vmem %s62_s18, 2048  ;;  %p3752_p0 = scmp.lt.s32.totalorder %s62_s18, %s62_s18 }
  0x3f   :  { %p3748_p13 = scmp.ne.s32.totalorder %s62_s18, %s3747_s25  ;;  %p3753_p1 = scmp.lt.s32.totalorder %s3747_s25, %s3747_s25 }
  0x41   :  { %p3754_p2 = por %p3753_p1, %p3752_p0 }
  0x43   :  { %p3755_p3 = pnand %p3754_p2, %p3748_p13 }
  0x45   :  { %3758 = shalt.err (!%p3755_p3)
}
  0x46   :  { %s3797_s3 = smov 64   ;;  %s3798_s26 = smov 4  }
  0x47   :  { %67 = dma.hbm_to_vmem [thread:$0]  %s4000_s5, 2048, %s62_s18, [#allocation9], %s3797_s3, %s3797_s3, %s3798_s26  }
  0x48   :  { %3781 = dma.done.wait [#allocation3], 1024  }
  0x49   :  { %3782 = vsyncadd [#allocation3], 4294966272 }
  0x4a   :  { %3783 = dma.done.wait [#allocation6], 40960  }
  0x4b   :  { %3784 = vsyncadd [#allocation6], 4294926336 }
  0x4c   :  { %3785 = dma.done.wait [#allocation9], 2048  }
  0x4d   :  { %3786 = vsyncadd [#allocation9], 4294965248  ;;  %v3163_v0 = vld [vmem:[#allocation5 + $0x4] ss:$16 sps:$4 sm:$0xff]   ;;  %v3167_v2 = vld [vmem:[#allocation5] ss:$16 sps:$4 sm:$0xff]   ;;  %v106_v40 = vlaneseq }
  0x4e   :  { %v3165_v1 = vld [vmem:[#allocation5 + $0x204] ss:$16 sps:$4 sm:$0xff]   ;;  %1745 = vmatprep.subr.bf16.mxu1 %v3163_v0  ;;  %v3168_v3 = vld [vmem:[#allocation5 + $0x200] ss:$16 sps:$4 sm:$0xff]   ;;  %v3799_v38 = vmov 1983009808  }
  0x4f   :  { %1786 = vmatprep.subr.bf16.mxu0 %v3165_v1  ;;  %v3169_v4 = vld [vmem:[#allocation5 + $0x24] ss:$16 sps:$4 sm:$0xff]   ;;  %1746 = vmatpush1.bf16.msra.mxu1 %v3167_v2  ;;  %v3173_v6 = vld [vmem:[#allocation5 + $0x20] ss:$16 sps:$4 sm:$0xff]   ;;  %v104_v39 = vunpack.c.l.s4 %v3799_v38  ;;  %v3899_v46 = vshrl.u32 %v106_v40, 7 }
  0x50   :  { %1787 = vmatpush1.bf16.msra.mxu0 %v3168_v3  ;;  %v3171_v5 = vld [vmem:[#allocation5 + $0x224] ss:$16 sps:$4 sm:$0xff]   ;;  %1747 = vmatprep.subr.bf16.mxu1 %v3169_v4  ;;  %v3174_v7 = vld [vmem:[#allocation5 + $0x220] ss:$16 sps:$4 sm:$0xff]  }
  0x51   :  { %1788 = vmatprep.subr.bf16.mxu0 %v3171_v5  ;;  %v3175_v8 = vld [vmem:[#allocation5 + $0x44] ss:$16 sps:$4 sm:$0xff]   ;;  %v3179_v10 = vld [vmem:[#allocation5 + $0x40] ss:$16 sps:$4 sm:$0xff]   ;;  %v105_v45 = vunpack.c.0.s8 %v104_v39  ;;  %v3294_v39 = vld [vmem:[#allocation5 + $0x8c] ss:$16 sps:$4 sm:$0xff]  }
  0x52   :  { %v3177_v9 = vld [vmem:[#allocation5 + $0x244] ss:$16 sps:$4 sm:$0xff]   ;;  %v3180_v11 = vld [vmem:[#allocation5 + $0x240] ss:$16 sps:$4 sm:$0xff]  }
  0x53   :  { %1748 = vmatpush1.bf16.msra.mxu1 %v3173_v6  ;;  %v3181_v12 = vld [vmem:[#allocation5 + $0x64] ss:$16 sps:$4 sm:$0xff]   ;;  %v3185_v14 = vld [vmem:[#allocation5 + $0x60] ss:$16 sps:$4 sm:$0xff]   ;;  %v3902_v53 = vsub.s32 %v105_v45, %v3899_v46  ;;  %v3298_v45 = vld [vmem:[#allocation5 + $0xa8] ss:$16 sps:$4 sm:$0xff]  }
  0x54   :  { %1789 = vmatpush1.bf16.msra.mxu0 %v3174_v7  ;;  %1749 = vmatprep.subr.bf16.mxu1 %v3175_v8  ;;  %v3183_v13 = vld [vmem:[#allocation5 + $0x264] ss:$16 sps:$4 sm:$0xff]   ;;  %v3186_v15 = vld [vmem:[#allocation5 + $0x260] ss:$16 sps:$4 sm:$0xff]  }
  0x55   :  { %1790 = vmatprep.subr.bf16.mxu0 %v3177_v9  ;;  %v3187_v16 = vld [vmem:[#allocation5 + $0x84] ss:$16 sps:$4 sm:$0xff]   ;;  %v3191_v18 = vld [vmem:[#allocation5 + $0x80] ss:$16 sps:$4 sm:$0xff]  }
  0x56   :  { %v3189_v17 = vld [vmem:[#allocation5 + $0x284] ss:$16 sps:$4 sm:$0xff]   ;;  %v3192_v19 = vld [vmem:[#allocation5 + $0x280] ss:$16 sps:$4 sm:$0xff]  }
  0x57   :  { %1750 = vmatpush1.bf16.msra.mxu1 %v3179_v10  ;;  %v3193_v20 = vld [vmem:[#allocation5 + $0xa4] ss:$16 sps:$4 sm:$0xff]   ;;  %v3197_v22 = vld [vmem:[#allocation5 + $0xa0] ss:$16 sps:$4 sm:$0xff]  }
  0x58   :  { %1791 = vmatpush1.bf16.msra.mxu0 %v3180_v11  ;;  %1751 = vmatprep.subr.bf16.mxu1 %v3181_v12  ;;  %v3195_v21 = vld [vmem:[#allocation5 + $0x2a4] ss:$16 sps:$4 sm:$0xff]   ;;  %v3198_v23 = vld [vmem:[#allocation5 + $0x2a0] ss:$16 sps:$4 sm:$0xff]  }
  0x59   :  { %1792 = vmatprep.subr.bf16.mxu0 %v3183_v13  ;;  %v3199_v24 = vld [vmem:[#allocation5 + $0xc4] ss:$16 sps:$4 sm:$0xff]   ;;  %v3203_v26 = vld [vmem:[#allocation5 + $0xc0] ss:$16 sps:$4 sm:$0xff]  }
  0x5a   :  { %v3201_v25 = vld [vmem:[#allocation5 + $0x2c4] ss:$16 sps:$4 sm:$0xff]   ;;  %v3204_v27 = vld [vmem:[#allocation5 + $0x2c0] ss:$16 sps:$4 sm:$0xff]  }
  0x5b   :  { %1752 = vmatpush1.bf16.msra.mxu1 %v3185_v14  ;;  %v3205_v28 = vld [vmem:[#allocation5 + $0xe4] ss:$16 sps:$4 sm:$0xff]   ;;  %v3209_v30 = vld [vmem:[#allocation5 + $0xe0] ss:$16 sps:$4 sm:$0xff]  }
  0x5c   :  { %1793 = vmatpush1.bf16.msra.mxu0 %v3186_v15  ;;  %1753 = vmatprep.subr.bf16.mxu1 %v3187_v16  ;;  %v3207_v29 = vld [vmem:[#allocation5 + $0x2e4] ss:$16 sps:$4 sm:$0xff]   ;;  %v3210_v31 = vld [vmem:[#allocation5 + $0x2e0] ss:$16 sps:$4 sm:$0xff]  }
  0x5d   :  { %1794 = vmatprep.subr.bf16.mxu0 %v3189_v17  ;;  %v3211_v32 = vld [vmem:[#allocation5 + $0x104] ss:$16 sps:$4 sm:$0xff]   ;;  %v3215_v34 = vld [vmem:[#allocation5 + $0x100] ss:$16 sps:$4 sm:$0xff]  }
  0x5e   :  { %v3213_v33 = vld [vmem:[#allocation5 + $0x304] ss:$16 sps:$4 sm:$0xff]   ;;  %v3216_v35 = vld [vmem:[#allocation5 + $0x300] ss:$16 sps:$4 sm:$0xff]  }
  0x5f   :  { %1754 = vmatpush1.bf16.msra.mxu1 %v3191_v18  ;;  %v3217_v36 = vld [vmem:[#allocation5 + $0x124] ss:$16 sps:$4 sm:$0xff]   ;;  %v3221_v41 = vld [vmem:[#allocation5 + $0x120] ss:$16 sps:$4 sm:$0xff]  }
  0x60   :  { %1795 = vmatpush1.bf16.msra.mxu0 %v3192_v19  ;;  %1755 = vmatprep.subr.bf16.mxu1 %v3193_v20  ;;  %v3219_v37 = vld [vmem:[#allocation5 + $0x324] ss:$16 sps:$4 sm:$0xff]   ;;  %v3222_v42 = vld [vmem:[#allocation5 + $0x320] ss:$16 sps:$4 sm:$0xff]  }
  0x61   :  { %1796 = vmatprep.subr.bf16.mxu0 %v3195_v21  ;;  %v3223_v43 = vld [vmem:[#allocation5 + $0x144] ss:$16 sps:$4 sm:$0xff]   ;;  %v3227_v47 = vld [vmem:[#allocation5 + $0x140] ss:$16 sps:$4 sm:$0xff]   ;;  %v3270_v21 = vld [vmem:[#allocation5 + $0xc] ss:$16 sps:$4 sm:$0xff]  }
  0x62   :  { %v3225_v44 = vld [vmem:[#allocation5 + $0x344] ss:$16 sps:$4 sm:$0xff]   ;;  %v3228_v48 = vld [vmem:[#allocation5 + $0x340] ss:$16 sps:$4 sm:$0xff]  }
  0x63   :  { %1756 = vmatpush1.bf16.msra.mxu1 %v3197_v22  ;;  %v3229_v49 = vld [vmem:[#allocation5 + $0x164] ss:$16 sps:$4 sm:$0xff]   ;;  %v3233_v51 = vld [vmem:[#allocation5 + $0x160] ss:$16 sps:$4 sm:$0xff]  }
  0x64   :  { %1797 = vmatpush1.bf16.msra.mxu0 %v3198_v23  ;;  %1757 = vmatprep.subr.bf16.mxu1 %v3199_v24  ;;  %v3231_v50 = vld [vmem:[#allocation5 + $0x364] ss:$16 sps:$4 sm:$0xff]   ;;  %v3234_v52 = vld [vmem:[#allocation5 + $0x360] ss:$16 sps:$4 sm:$0xff]   ;;  %v3268_v24 = vld [vmem:[#allocation5 + $0x8] ss:$16 sps:$4 sm:$0xff]  }
  0x65   :  { %1798 = vmatprep.subr.bf16.mxu0 %v3201_v25  ;;  %v3235_v54 = vld [vmem:[#allocation5 + $0x184] ss:$16 sps:$4 sm:$0xff]   ;;  %v3259_v56 = vld [vmem:[#allocation2] ss:$16 sps:$4 sm:$0xff]  }
  0x66   :  { %v3237_v55 = vld [vmem:[#allocation5 + $0x384] ss:$16 sps:$4 sm:$0xff]   ;;  %v3261_v57 = vld [vmem:[#allocation2 + $0x20] ss:$16 sps:$4 sm:$0xff]   ;;  %v109_v60 = vrot.slane %v3259_v56, %v3902_v53 }
  0x67   :  { %1758 = vmatpush1.bf16.msra.mxu1 %v3203_v26  ;;  %v3263_v58 = vld [vmem:[#allocation2 + $0x4] ss:$16 sps:$4 sm:$0xff]   ;;  %v123_v61 = vrot.slane %v3261_v57, %v3902_v53  ;;  %v3239_v63 = vld [vmem:[#allocation5 + $0x180] ss:$16 sps:$4 sm:$0xff]  }
  0x68   :  { %1799 = vmatpush1.bf16.msra.mxu0 %v3204_v27  ;;  %1759 = vmatprep.subr.bf16.mxu1 %v3205_v28  ;;  %v3264_v59 = vld [vmem:[#allocation2 + $0x24] ss:$16 sps:$4 sm:$0xff]   ;;  %v116_v62 = vrot.slane %v3263_v58, %v3902_v53  ;;  %v3240_v0 = vld [vmem:[#allocation5 + $0x380] ss:$16 sps:$4 sm:$0xff]   ;;  %v3276_v27 = vld [vmem:[#allocation5 + $0x2c] ss:$16 sps:$4 sm:$0xff]  }
  0x69   :  { %1800 = vmatprep.subr.bf16.mxu0 %v3207_v29  ;;  %v130_v1 = vrot.slane %v3264_v59, %v3902_v53  ;;  %v3241_v2 = vld [vmem:[#allocation5 + $0x1a4] ss:$16 sps:$4 sm:$0xff]   ;;  %v132_v3 = vcombine.high %v109_v60, %v123_v61  ;;  %v3245_v7 = vld [vmem:[#allocation5 + $0x1a0] ss:$16 sps:$4 sm:$0xff]   ;;  %v131_v18 = vcombine.low %v109_v60, %v123_v61  ;;  %v3274_v29 = vld [vmem:[#allocation5 + $0x28] ss:$16 sps:$4 sm:$0xff]  }
  0x6a   :  { %v3243_v4 = vld [vmem:[#allocation5 + $0x3a4] ss:$16 sps:$4 sm:$0xff]   ;;  %v3246_v8 = vld [vmem:[#allocation5 + $0x3a0] ss:$16 sps:$4 sm:$0xff]   ;;  %v3310_v59 = vld [vmem:[#allocation5 + $0xe8] ss:$16 sps:$4 sm:$0xff]  }
  0x6b   :  { %1760 = vmatpush1.bf16.msra.mxu1 %v3209_v30  ;;  %v134_v5 = vcombine.high %v116_v62, %v130_v1  ;;  %v180_v6 = vpack.c.bf16 %v132_v3, %v132_v3  ;;  %v3247_v10 = vld [vmem:[#allocation5 + $0x1c4] ss:$16 sps:$4 sm:$0xff]   ;;  %v3251_v12 = vld [vmem:[#allocation5 + $0x1c0] ss:$16 sps:$4 sm:$0xff]   ;;  %v133_v19 = vcombine.low %v116_v62, %v130_v1  ;;  %v3911_v22 = vpack.c.bf16 %v131_v18, %v131_v18  ;;  %v3318_v61 = vld [vmem:[#allocation5 + $0x10c] ss:$16 sps:$4 sm:$0xff]  }
  0x6c   :  { %1801 = vmatpush1.bf16.msra.mxu0 %v3210_v31  ;;  %1761 = vmatprep.subr.bf16.mxu1 %v3211_v32  ;;  %v3249_v11 = vld [vmem:[#allocation5 + $0x3c4] ss:$16 sps:$4 sm:$0xff]   ;;  %v3252_v13 = vld [vmem:[#allocation5 + $0x3c0] ss:$16 sps:$4 sm:$0xff]   ;;  %v3282_v31 = vld [vmem:[#allocation5 + $0x4c] ss:$16 sps:$4 sm:$0xff]  }
  0x6d   :  { %1802 = vmatprep.subr.bf16.mxu0 %v3213_v33  ;;  %v3908_v9 = vpack.c.bf16 %v134_v5, %v134_v5  ;;  %1777 = vmatprep.mubr.bf16.mxu1 %v180_v6  ;;  %v3253_v14 = vld [vmem:[#allocation5 + $0x1e4] ss:$16 sps:$4 sm:$0xff]   ;;  %v3257_v16 = vld [vmem:[#allocation5 + $0x1e0] ss:$16 sps:$4 sm:$0xff]   ;;  %v3913_v25 = vpack.c.bf16 %v133_v19, %v133_v19  ;;  %v3280_v33 = vld [vmem:[#allocation5 + $0x48] ss:$16 sps:$4 sm:$0xff]  }
  0x6e   :  { %v3255_v15 = vld [vmem:[#allocation5 + $0x3e4] ss:$16 sps:$4 sm:$0xff]   ;;  %v3258_v17 = vld [vmem:[#allocation5 + $0x3e0] ss:$16 sps:$4 sm:$0xff]   ;;  %v3316_v1 = vld [vmem:[#allocation5 + $0x108] ss:$16 sps:$4 sm:$0xff]  }
  0x6f   :  { %1762 = vmatpush1.bf16.msra.mxu1 %v3215_v34  ;;  %1818 = vmatprep.mubr.bf16.mxu0 %v3908_v9  ;;  %v3267_v20 = vld [vmem:[#allocation5 + $0x404] ss:$16 sps:$4 sm:$0xff]   ;;  %v3265_v23 = vld [vmem:[#allocation5 + $0x400] ss:$16 sps:$4 sm:$0xff]   ;;  %v3324_v3 = vld [vmem:[#allocation5 + $0x12c] ss:$16 sps:$4 sm:$0xff]  }
  0x70   :  { %1803 = vmatpush1.bf16.msra.mxu0 %v3216_v35  ;;  %1763 = vmatprep.subr.bf16.mxu1 %v3217_v36  ;;  %v3273_v26 = vld [vmem:[#allocation5 + $0x424] ss:$16 sps:$4 sm:$0xff]   ;;  %v3271_v28 = vld [vmem:[#allocation5 + $0x420] ss:$16 sps:$4 sm:$0xff]   ;;  %v3288_v35 = vld [vmem:[#allocation5 + $0x6c] ss:$16 sps:$4 sm:$0xff]  }
  0x71   :  { %1804 = vmatprep.subr.bf16.mxu0 %v3219_v37  ;;  %v3279_v30 = vld [vmem:[#allocation5 + $0x444] ss:$16 sps:$4 sm:$0xff]   ;;  %v3277_v32 = vld [vmem:[#allocation5 + $0x440] ss:$16 sps:$4 sm:$0xff]   ;;  %v3286_v37 = vld [vmem:[#allocation5 + $0x68] ss:$16 sps:$4 sm:$0xff]  }
  0x72   :  { %v3285_v34 = vld [vmem:[#allocation5 + $0x464] ss:$16 sps:$4 sm:$0xff]   ;;  %v3283_v36 = vld [vmem:[#allocation5 + $0x460] ss:$16 sps:$4 sm:$0xff]   ;;  %v3322_v5 = vld [vmem:[#allocation5 + $0x128] ss:$16 sps:$4 sm:$0xff]  }
  0x73   :  { %1764 = vmatpush1.bf16.msra.mxu1 %v3221_v41  ;;  %v3291_v38 = vld [vmem:[#allocation5 + $0x484] ss:$16 sps:$4 sm:$0xff]   ;;  %v3289_v40 = vld [vmem:[#allocation5 + $0x480] ss:$16 sps:$4 sm:$0xff]   ;;  %v3292_v41 = vld [vmem:[#allocation5 + $0x88] ss:$16 sps:$4 sm:$0xff]  }
  0x74   :  { %1805 = vmatpush1.bf16.msra.mxu0 %v3222_v42  ;;  %1765 = vmatprep.subr.bf16.mxu1 %v3223_v43  ;;  %v3297_v42 = vld [vmem:[#allocation5 + $0x4a4] ss:$16 sps:$4 sm:$0xff]   ;;  %v3300_v43 = vld [vmem:[#allocation5 + $0xac] ss:$16 sps:$4 sm:$0xff]   ;;  %v3307_v58 = vld [vmem:[#allocation5 + $0x4e0] ss:$16 sps:$4 sm:$0xff]  }
  0x75   :  { %1806 = vmatprep.subr.bf16.mxu0 %v3225_v44  ;;  %v3295_v44 = vld [vmem:[#allocation5 + $0x4a0] ss:$16 sps:$4 sm:$0xff]   ;;  %v3315_v60 = vld [vmem:[#allocation5 + $0x504] ss:$16 sps:$4 sm:$0xff]   ;;  %v3340_v18 = vld [vmem:[#allocation5 + $0x188] ss:$16 sps:$4 sm:$0xff]  }
  0x76   :  { %v3345_v19 = vld [vmem:[#allocation5 + $0x5a4] ss:$16 sps:$4 sm:$0xff]  }
  0x77   :  { %1766 = vmatpush1.bf16.msra.mxu1 %v3227_v47  ;;  %v3303_v47 = vld [vmem:[#allocation5 + $0x4c4] ss:$16 sps:$4 sm:$0xff]  }
  0x78   :  { %1807 = vmatpush1.bf16.msra.mxu0 %v3228_v48  ;;  %1767 = vmatprep.subr.bf16.mxu1 %v3229_v49  ;;  %v3306_v48 = vld [vmem:[#allocation5 + $0xcc] ss:$16 sps:$4 sm:$0xff]   ;;  %v3301_v49 = vld [vmem:[#allocation5 + $0x4c0] ss:$16 sps:$4 sm:$0xff]  }
  0x79   :  { %1808 = vmatprep.subr.bf16.mxu0 %v3231_v50  ;;  %v3304_v50 = vld [vmem:[#allocation5 + $0xc8] ss:$16 sps:$4 sm:$0xff]  }
  0x7b   :  { %1768 = vmatpush1.bf16.msra.mxu1 %v3233_v51  ;;  %v3309_v51 = vld [vmem:[#allocation5 + $0x4e4] ss:$16 sps:$4 sm:$0xff]  }
  0x7c   :  { %1809 = vmatpush1.bf16.msra.mxu0 %v3234_v52  ;;  %1769 = vmatprep.subr.bf16.mxu1 %v3235_v54  ;;  %v3312_v52 = vld [vmem:[#allocation5 + $0xec] ss:$16 sps:$4 sm:$0xff]   ;;  %v3361_v54 = vld [vmem:[#allocation2 + $0x8] ss:$16 sps:$4 sm:$0xff]  }
  0x7d   :  { %1810 = vmatprep.subr.bf16.mxu0 %v3237_v55  ;;  %v3363_v55 = vld [vmem:[#allocation2 + $0x28] ss:$16 sps:$4 sm:$0xff]   ;;  %v3918_v56 = vrot.slane %v3361_v54, %v3902_v53 }
  0x7e   :  { %v3921_v57 = vrot.slane %v3363_v55, %v3902_v53  ;;  %v3383_v55 = vld [vmem:[#allocation5 + $0x660] ss:$16 sps:$4 sm:$0xff]  }
  0x7f   :  { %1770 = vmatpush1.bf16.msra.mxu1 %v3239_v63 }
  0x80   :  { %1811 = vmatpush1.bf16.msra.mxu0 %v3240_v0  ;;  %1771 = vmatprep.subr.bf16.mxu1 %v3241_v2  ;;  %v168_v62 = vcombine.high %v3918_v56, %v3921_v57  ;;  %v3313_v0 = vld [vmem:[#allocation5 + $0x500] ss:$16 sps:$4 sm:$0xff]   ;;  %v3321_v2 = vld [vmem:[#allocation5 + $0x524] ss:$16 sps:$4 sm:$0xff]  }
  0x81   :  { %1812 = vmatprep.subr.bf16.mxu0 %v3243_v4  ;;  %v3319_v4 = vld [vmem:[#allocation5 + $0x520] ss:$16 sps:$4 sm:$0xff]  }
  0x82   :  { %v3925_v63 = vpack.c.bf16 %v168_v62, %v168_v62  ;;  %v3395_v62 = vld [vmem:[#allocation5 + $0x6a0] ss:$16 sps:$4 sm:$0xff]  }
  0x83   :  { %1772 = vmatpush1.bf16.msra.mxu1 %v3245_v7  ;;  %v3330_v7 = vld [vmem:[#allocation5 + $0x14c] ss:$16 sps:$4 sm:$0xff]  }
  0x84   :  { %1813 = vmatpush1.bf16.msra.mxu0 %v3246_v8  ;;  %1773 = vmatprep.subr.bf16.mxu1 %v3247_v10  ;;  %v3325_v8 = vld [vmem:[#allocation5 + $0x540] ss:$16 sps:$4 sm:$0xff]   ;;  %v3328_v10 = vld [vmem:[#allocation5 + $0x148] ss:$16 sps:$4 sm:$0xff]  }
  0x85   :  { %1814 = vmatprep.subr.bf16.mxu0 %v3249_v11  ;;  %v3333_v11 = vld [vmem:[#allocation5 + $0x564] ss:$16 sps:$4 sm:$0xff]  }
  0x87   :  { %1774 = vmatpush1.bf16.msra.mxu1 %v3251_v12  ;;  %v3336_v12 = vld [vmem:[#allocation5 + $0x16c] ss:$16 sps:$4 sm:$0xff]  }
  0x88   :  { %1815 = vmatpush1.bf16.msra.mxu0 %v3252_v13  ;;  %1775 = vmatprep.subr.bf16.mxu1 %v3253_v14  ;;  %v3331_v13 = vld [vmem:[#allocation5 + $0x560] ss:$16 sps:$4 sm:$0xff]   ;;  %v3334_v14 = vld [vmem:[#allocation5 + $0x168] ss:$16 sps:$4 sm:$0xff]  }
  0x89   :  { %1816 = vmatprep.subr.bf16.mxu0 %v3255_v15  ;;  %v3339_v15 = vld [vmem:[#allocation5 + $0x584] ss:$16 sps:$4 sm:$0xff]  }
  0x8b   :  { %1776 = vmatpush1.bf16.msra.mxu1 %v3257_v16  ;;  %v3342_v16 = vld [vmem:[#allocation5 + $0x18c] ss:$16 sps:$4 sm:$0xff]  }
  0x8c   :  { %1817 = vmatpush1.bf16.msra.mxu0 %v3258_v17  ;;  %1909 = vmatprep.subr.bf16.mxu1 %v3270_v21  ;;  %v3337_v17 = vld [vmem:[#allocation5 + $0x580] ss:$16 sps:$4 sm:$0xff]  }
  0x8d   :  { %1827 = vmatprep.subr.bf16.mxu0 %v3267_v20  ;;  %v3348_v20 = vld [vmem:[#allocation5 + $0x1ac] ss:$16 sps:$4 sm:$0xff]   ;;  %v3343_v21 = vld [vmem:[#allocation5 + $0x5a0] ss:$16 sps:$4 sm:$0xff]  }
  0x8e   :  { %1778 = vmatmul.mubr.bf16.vlgmr.msra.gmra.mrb[0].mxu1 %v3911_v22 }
  0x8f   :  { %1819 = vmatmul.mubr.bf16.vlgmr.msra.gmra.mrb[0].mxu0 %v3913_v25  ;;  %1910 = vmatpush1.bf16.msra.mxu1 %v3268_v24  ;;  %v3351_v24 = vld [vmem:[#allocation5 + $0x5c4] ss:$16 sps:$4 sm:$0xff]  }
  0x90   :  { %1828 = vmatpush1.bf16.msra.mxu0 %v3265_v23  ;;  %1911 = vmatprep.subr.bf16.mxu1 %v3276_v27  ;;  %v3346_v23 = vld [vmem:[#allocation5 + $0x1a8] ss:$16 sps:$4 sm:$0xff]   ;;  %v3349_v27 = vld [vmem:[#allocation5 + $0x5c0] ss:$16 sps:$4 sm:$0xff]  }
  0x91   :  { %1829 = vmatprep.subr.bf16.mxu0 %v3273_v26  ;;  %1941 = vmatprep.mubr.bf16.mxu1 %v180_v6  ;;  %v3327_v6 = vld [vmem:[#allocation5 + $0x544] ss:$16 sps:$4 sm:$0xff]   ;;  %v3354_v26 = vld [vmem:[#allocation5 + $0x1cc] ss:$16 sps:$4 sm:$0xff]  }
  0x92   :  { %1859 = vmatprep.mubr.bf16.mxu0 %v3925_v63 }
  0x93   :  { %1912 = vmatpush1.bf16.msra.mxu1 %v3274_v29  ;;  %v3357_v29 = vld [vmem:[#allocation5 + $0x5e4] ss:$16 sps:$4 sm:$0xff]  }
  0x94   :  { %1830 = vmatpush1.bf16.msra.mxu0 %v3271_v28  ;;  %1913 = vmatprep.subr.bf16.mxu1 %v3282_v31  ;;  %v3352_v28 = vld [vmem:[#allocation5 + $0x1c8] ss:$16 sps:$4 sm:$0xff]   ;;  %v167_v31 = vcombine.low %v3918_v56, %v3921_v57 }
  0x95   :  { %1831 = vmatprep.subr.bf16.mxu0 %v3279_v30  ;;  %v3360_v30 = vld [vmem:[#allocation5 + $0x1ec] ss:$16 sps:$4 sm:$0xff]   ;;  %v3386_v56 = vld [vmem:[#allocation5 + $0x268] ss:$16 sps:$4 sm:$0xff]  }
  0x97   :  { %1914 = vmatpush1.bf16.msra.mxu1 %v3280_v33  ;;  %v3358_v33 = vld [vmem:[#allocation5 + $0x1e8] ss:$16 sps:$4 sm:$0xff]  }
  0x98   :  { %1832 = vmatpush1.bf16.msra.mxu0 %v3277_v32  ;;  %1915 = vmatprep.subr.bf16.mxu1 %v3288_v35  ;;  %v3355_v32 = vld [vmem:[#allocation5 + $0x5e0] ss:$16 sps:$4 sm:$0xff]   ;;  %v3370_v35 = vld [vmem:[#allocation5 + $0x20c] ss:$16 sps:$4 sm:$0xff]  }
  0x99   :  { %1833 = vmatprep.subr.bf16.mxu0 %v3285_v34  ;;  %v3367_v34 = vld [vmem:[#allocation5 + $0x604] ss:$16 sps:$4 sm:$0xff]  }
  0x9b   :  { %1916 = vmatpush1.bf16.msra.mxu1 %v3286_v37  ;;  %v3365_v37 = vld [vmem:[#allocation5 + $0x600] ss:$16 sps:$4 sm:$0xff]  }
  0x9c   :  { %1834 = vmatpush1.bf16.msra.mxu0 %v3283_v36  ;;  %1917 = vmatprep.subr.bf16.mxu1 %v3294_v39  ;;  %v3930_v36 = vpack.c.bf16 %v167_v31, %v167_v31  ;;  %v3373_v39 = vld [vmem:[#allocation5 + $0x624] ss:$16 sps:$4 sm:$0xff]   ;;  %v3440_v31 = vld [vmem:[#allocation5 + $0x388] ss:$16 sps:$4 sm:$0xff]  }
  0x9d   :  { %1835 = vmatprep.subr.bf16.mxu0 %v3291_v38  ;;  %v3368_v38 = vld [vmem:[#allocation5 + $0x208] ss:$16 sps:$4 sm:$0xff]  }
  0x9f   :  { %1918 = vmatpush1.bf16.msra.mxu1 %v3292_v41  ;;  %v3371_v41 = vld [vmem:[#allocation5 + $0x620] ss:$16 sps:$4 sm:$0xff]  }
  0xa0   :  { %1836 = vmatpush1.bf16.msra.mxu0 %v3289_v40  ;;  %1919 = vmatprep.subr.bf16.mxu1 %v3300_v43  ;;  %v3376_v40 = vld [vmem:[#allocation5 + $0x22c] ss:$16 sps:$4 sm:$0xff]   ;;  %v3379_v43 = vld [vmem:[#allocation5 + $0x644] ss:$16 sps:$4 sm:$0xff]  }
  0xa1   :  { %1837 = vmatprep.subr.bf16.mxu0 %v3297_v42  ;;  %v3374_v42 = vld [vmem:[#allocation5 + $0x228] ss:$16 sps:$4 sm:$0xff]  }
  0xa3   :  { %1920 = vmatpush1.bf16.msra.mxu1 %v3298_v45  ;;  %v3461_v45 = vld [vmem:[#allocation2 + $0xc] ss:$16 sps:$4 sm:$0xff]  }
  0xa4   :  { %1838 = vmatpush1.bf16.msra.mxu0 %v3295_v44  ;;  %1921 = vmatprep.subr.bf16.mxu1 %v3306_v48  ;;  %v3382_v44 = vld [vmem:[#allocation5 + $0x24c] ss:$16 sps:$4 sm:$0xff]   ;;  %v3935_v48 = vrot.slane %v3461_v45, %v3902_v53  ;;  %v3458_v45 = vld [vmem:[#allocation5 + $0x3e8] ss:$16 sps:$4 sm:$0xff]  }
  0xa5   :  { %1839 = vmatprep.subr.bf16.mxu0 %v3303_v47  ;;  %v3462_v47 = vld [vmem:[#allocation2 + $0x2c] ss:$16 sps:$4 sm:$0xff]  }
  0xa7   :  { %1922 = vmatpush1.bf16.msra.mxu1 %v3304_v50  ;;  %v3380_v50 = vld [vmem:[#allocation5 + $0x248] ss:$16 sps:$4 sm:$0xff]  }
  0xa8   :  { %1840 = vmatpush1.bf16.msra.mxu0 %v3301_v49  ;;  %1923 = vmatprep.subr.bf16.mxu1 %v3312_v52  ;;  %v3377_v49 = vld [vmem:[#allocation5 + $0x640] ss:$16 sps:$4 sm:$0xff]   ;;  %v3388_v52 = vld [vmem:[#allocation5 + $0x26c] ss:$16 sps:$4 sm:$0xff]  }
  0xa9   :  { %1841 = vmatprep.subr.bf16.mxu0 %v3309_v51  ;;  %v3939_v51 = vrot.slane %v3462_v47, %v3902_v53  ;;  %v3394_v53 = vld [vmem:[#allocation5 + $0x28c] ss:$16 sps:$4 sm:$0xff]  }
  0xaa   :  { %v3465_v47 = vld [vmem:[#allocation5 + $0x40c] ss:$16 sps:$4 sm:$0xff]  }
  0xab   :  { %1924 = vmatpush1.bf16.msra.mxu1 %v3310_v59  ;;  %v170_v54 = vcombine.high %v3935_v48, %v3939_v51  ;;  %v3392_v59 = vld [vmem:[#allocation5 + $0x288] ss:$16 sps:$4 sm:$0xff]  }
  0xac   :  { %1842 = vmatpush1.bf16.msra.mxu0 %v3307_v58  ;;  %1925 = vmatprep.subr.bf16.mxu1 %v3318_v61  ;;  %v3389_v58 = vld [vmem:[#allocation5 + $0x680] ss:$16 sps:$4 sm:$0xff]   ;;  %v3400_v61 = vld [vmem:[#allocation5 + $0x2ac] ss:$16 sps:$4 sm:$0xff]  }
  0xad   :  { %1843 = vmatprep.subr.bf16.mxu0 %v3315_v60  ;;  %v3943_v57 = vpack.c.bf16 %v170_v54, %v170_v54  ;;  %v3397_v60 = vld [vmem:[#allocation5 + $0x6a4] ss:$16 sps:$4 sm:$0xff]  }
  0xae   :  { %v3561_v54 = vld [vmem:[#allocation7 + $0x4] ss:$8 sps:$4 sm:$0xff]  }
  0xaf   :  { %1926 = vmatpush1.bf16.msra.mxu1 %v3316_v1  ;;  %v3403_v1 = vld [vmem:[#allocation5 + $0x6c4] ss:$16 sps:$4 sm:$0xff]  }
  0xb0   :  { %1844 = vmatpush1.bf16.msra.mxu0 %v3313_v0  ;;  %1927 = vmatprep.subr.bf16.mxu1 %v3324_v3  ;;  %v3398_v0 = vld [vmem:[#allocation5 + $0x2a8] ss:$16 sps:$4 sm:$0xff]   ;;  %v3401_v3 = vld [vmem:[#allocation5 + $0x6c0] ss:$16 sps:$4 sm:$0xff]  }
  0xb1   :  { %1845 = vmatprep.subr.bf16.mxu0 %v3321_v2  ;;  %v3406_v2 = vld [vmem:[#allocation5 + $0x2cc] ss:$16 sps:$4 sm:$0xff]  }
  0xb3   :  { %1928 = vmatpush1.bf16.msra.mxu1 %v3322_v5  ;;  %v3409_v5 = vld [vmem:[#allocation5 + $0x6e4] ss:$16 sps:$4 sm:$0xff]  }
  0xb4   :  { %1846 = vmatpush1.bf16.msra.mxu0 %v3319_v4  ;;  %1929 = vmatprep.subr.bf16.mxu1 %v3330_v7  ;;  %v3404_v4 = vld [vmem:[#allocation5 + $0x2c8] ss:$16 sps:$4 sm:$0xff]   ;;  %v3407_v7 = vld [vmem:[#allocation5 + $0x6e0] ss:$16 sps:$4 sm:$0xff]  }
  0xb5   :  { %1847 = vmatprep.subr.bf16.mxu0 %v3327_v6  ;;  %v3412_v6 = vld [vmem:[#allocation5 + $0x2ec] ss:$16 sps:$4 sm:$0xff]  }
  0xb7   :  { %1930 = vmatpush1.bf16.msra.mxu1 %v3328_v10  ;;  %v3415_v10 = vld [vmem:[#allocation5 + $0x704] ss:$16 sps:$4 sm:$0xff]  }
  0xb8   :  { %1848 = vmatpush1.bf16.msra.mxu0 %v3325_v8  ;;  %1931 = vmatprep.subr.bf16.mxu1 %v3336_v12  ;;  %v3410_v8 = vld [vmem:[#allocation5 + $0x2e8] ss:$16 sps:$4 sm:$0xff]   ;;  %v3413_v12 = vld [vmem:[#allocation5 + $0x700] ss:$16 sps:$4 sm:$0xff]  }
  0xb9   :  { %1849 = vmatprep.subr.bf16.mxu0 %v3333_v11  ;;  %v3418_v11 = vld [vmem:[#allocation5 + $0x30c] ss:$16 sps:$4 sm:$0xff]  }
  0xbb   :  { %1932 = vmatpush1.bf16.msra.mxu1 %v3334_v14  ;;  %v3421_v14 = vld [vmem:[#allocation5 + $0x724] ss:$16 sps:$4 sm:$0xff]  }
  0xbc   :  { %1850 = vmatpush1.bf16.msra.mxu0 %v3331_v13  ;;  %1933 = vmatprep.subr.bf16.mxu1 %v3342_v16  ;;  %v3416_v13 = vld [vmem:[#allocation5 + $0x308] ss:$16 sps:$4 sm:$0xff]   ;;  %v3419_v16 = vld [vmem:[#allocation5 + $0x720] ss:$16 sps:$4 sm:$0xff]  }
  0xbd   :  { %1851 = vmatprep.subr.bf16.mxu0 %v3339_v15  ;;  %v3424_v15 = vld [vmem:[#allocation5 + $0x32c] ss:$16 sps:$4 sm:$0xff]  }
  0xbf   :  { %1934 = vmatpush1.bf16.msra.mxu1 %v3340_v18  ;;  %v3427_v18 = vld [vmem:[#allocation5 + $0x744] ss:$16 sps:$4 sm:$0xff]  }
  0xc0   :  { %1852 = vmatpush1.bf16.msra.mxu0 %v3337_v17  ;;  %1935 = vmatprep.subr.bf16.mxu1 %v3348_v20  ;;  %v3422_v17 = vld [vmem:[#allocation5 + $0x328] ss:$16 sps:$4 sm:$0xff]   ;;  %v3425_v20 = vld [vmem:[#allocation5 + $0x740] ss:$16 sps:$4 sm:$0xff]  }
  0xc1   :  { %1853 = vmatprep.subr.bf16.mxu0 %v3345_v19  ;;  %v3430_v19 = vld [vmem:[#allocation5 + $0x34c] ss:$16 sps:$4 sm:$0xff]  }
  0xc3   :  { %1936 = vmatpush1.bf16.msra.mxu1 %v3346_v23  ;;  %v3433_v23 = vld [vmem:[#allocation5 + $0x764] ss:$16 sps:$4 sm:$0xff]  }
  0xc4   :  { %1854 = vmatpush1.bf16.msra.mxu0 %v3343_v21  ;;  %1937 = vmatprep.subr.bf16.mxu1 %v3354_v26  ;;  %v3428_v21 = vld [vmem:[#allocation5 + $0x348] ss:$16 sps:$4 sm:$0xff]   ;;  %v3431_v26 = vld [vmem:[#allocation5 + $0x760] ss:$16 sps:$4 sm:$0xff]  }
  0xc5   :  { %1855 = vmatprep.subr.bf16.mxu0 %v3351_v24  ;;  %v3436_v24 = vld [vmem:[#allocation5 + $0x36c] ss:$16 sps:$4 sm:$0xff]  }
  0xc7   :  { %1938 = vmatpush1.bf16.msra.mxu1 %v3352_v28  ;;  %v3439_v28 = vld [vmem:[#allocation5 + $0x784] ss:$16 sps:$4 sm:$0xff]  }
  0xc8   :  { %1856 = vmatpush1.bf16.msra.mxu0 %v3349_v27  ;;  %1939 = vmatprep.subr.bf16.mxu1 %v3360_v30  ;;  %v3434_v27 = vld [vmem:[#allocation5 + $0x368] ss:$16 sps:$4 sm:$0xff]   ;;  %v3437_v30 = vld [vmem:[#allocation5 + $0x780] ss:$16 sps:$4 sm:$0xff]  }
  0xc9   :  { %1857 = vmatprep.subr.bf16.mxu0 %v3357_v29  ;;  %v3442_v29 = vld [vmem:[#allocation5 + $0x38c] ss:$16 sps:$4 sm:$0xff]  }
  0xcb   :  { %1940 = vmatpush1.bf16.msra.mxu1 %v3358_v33  ;;  %v3448_v33 = vld [vmem:[#allocation5 + $0x3ac] ss:$16 sps:$4 sm:$0xff]  }
  0xcc   :  { %1858 = vmatpush1.bf16.msra.mxu0 %v3355_v32  ;;  %1950 = vmatprep.subr.bf16.mxu1 %v3370_v35  ;;  %v3445_v32 = vld [vmem:[#allocation5 + $0x7a4] ss:$16 sps:$4 sm:$0xff]   ;;  %v3446_v35 = vld [vmem:[#allocation5 + $0x3a8] ss:$16 sps:$4 sm:$0xff]  }
  0xcd   :  { %1868 = vmatprep.subr.bf16.mxu0 %v3367_v34  ;;  %v3443_v34 = vld [vmem:[#allocation5 + $0x7a0] ss:$16 sps:$4 sm:$0xff]  }
  0xce   :  { %1942 = vmatmul.mubr.bf16.vlgmr.msra.gmra.mrb[4].mxu1 %v3911_v22  ;;  %v3385_v22 = vld [vmem:[#allocation5 + $0x664] ss:$16 sps:$4 sm:$0xff]  }
  0xcf   :  { %1860 = vmatmul.mubr.bf16.vlgmr.msra.gmra.mrb[0].mxu0 %v3930_v36  ;;  %1951 = vmatpush1.bf16.msra.mxu1 %v3368_v38  ;;  %v3454_v38 = vld [vmem:[#allocation5 + $0x3cc] ss:$16 sps:$4 sm:$0xff]  }
  0xd0   :  { %1869 = vmatpush1.bf16.msra.mxu0 %v3365_v37  ;;  %1952 = vmatprep.subr.bf16.mxu1 %v3376_v40  ;;  %v3451_v37 = vld [vmem:[#allocation5 + $0x7c4] ss:$16 sps:$4 sm:$0xff]   ;;  %v3452_v40 = vld [vmem:[#allocation5 + $0x3c8] ss:$16 sps:$4 sm:$0xff]  }
  0xd1   :  { %1870 = vmatprep.subr.bf16.mxu0 %v3373_v39  ;;  %1982 = vmatprep.mubr.bf16.mxu1 %v3908_v9  ;;  %v3391_v9 = vld [vmem:[#allocation5 + $0x684] ss:$16 sps:$4 sm:$0xff]   ;;  %v3449_v39 = vld [vmem:[#allocation5 + $0x7c0] ss:$16 sps:$4 sm:$0xff]  }
  0xd2   :  { %1900 = vmatprep.mubr.bf16.mxu0 %v3943_v57 }
  0xd3   :  { %1953 = vmatpush1.bf16.msra.mxu1 %v3374_v42  ;;  %v3460_v42 = vld [vmem:[#allocation5 + $0x3ec] ss:$16 sps:$4 sm:$0xff]  }
  0xd4   :  { %1871 = vmatpush1.bf16.msra.mxu0 %v3371_v41  ;;  %1954 = vmatprep.subr.bf16.mxu1 %v3382_v44  ;;  %v3457_v41 = vld [vmem:[#allocation5 + $0x7e4] ss:$16 sps:$4 sm:$0xff]   ;;  %v169_v44 = vcombine.low %v3935_v48, %v3939_v51  ;;  %v3466_v48 = vld [vmem:[#allocation5 + $0x428] ss:$16 sps:$4 sm:$0xff]  }
  0xd5   :  { %1872 = vmatprep.subr.bf16.mxu0 %v3379_v43  ;;  %v3455_v43 = vld [vmem:[#allocation5 + $0x7e0] ss:$16 sps:$4 sm:$0xff]   ;;  %v3564_v51 = vld [vmem:[#allocation7 + $0x14] ss:$8 sps:$4 sm:$0xff]  }
  0xd7   :  { %1955 = vmatpush1.bf16.msra.mxu1 %v3380_v50  ;;  %v3948_v50 = vpack.c.bf16 %v169_v44, %v169_v44  ;;  %v3510_v44 = vld [vmem:[#allocation5 + $0x5ec] ss:$16 sps:$4 sm:$0xff]  }
  0xd8   :  { %1873 = vmatpush1.bf16.msra.mxu0 %v3377_v49  ;;  %1956 = vmatprep.subr.bf16.mxu1 %v3388_v52  ;;  %v3463_v49 = vld [vmem:[#allocation5 + $0x408] ss:$16 sps:$4 sm:$0xff]  }
  0xd9   :  { %1874 = vmatprep.subr.bf16.mxu0 %v3385_v22  ;;  %v3468_v22 = vld [vmem:[#allocation5 + $0x42c] ss:$16 sps:$4 sm:$0xff]   ;;  %v3559_v52 = vld [vmem:[#allocation7] ss:$8 sps:$4 sm:$0xff]  }
  0xdb   :  { %1957 = vmatpush1.bf16.msra.mxu1 %v3386_v56  ;;  %v3562_v56 = vld [vmem:[#allocation7 + $0x10] ss:$8 sps:$4 sm:$0xff]  }
  0xdc   :  { %1875 = vmatpush1.bf16.msra.mxu0 %v3383_v55  ;;  %1958 = vmatprep.subr.bf16.mxu1 %v3394_v53  ;;  %v3471_v55 = vld [vmem:[#allocation5 + $0x44c] ss:$16 sps:$4 sm:$0xff]   ;;  %v3469_v53 = vld [vmem:[#allocation5 + $0x448] ss:$16 sps:$4 sm:$0xff]  }
  0xdd   :  { %1876 = vmatprep.subr.bf16.mxu0 %v3391_v9  ;;  %v3567_v9 = vld [vmem:[#allocation7 + $0x24] ss:$8 sps:$4 sm:$0xff]  }
  0xdf   :  { %1959 = vmatpush1.bf16.msra.mxu1 %v3392_v59  ;;  %v3472_v59 = vld [vmem:[#allocation5 + $0x468] ss:$16 sps:$4 sm:$0xff]  }
  0xe0   :  { %1877 = vmatpush1.bf16.msra.mxu0 %v3389_v58  ;;  %1960 = vmatprep.subr.bf16.mxu1 %v3400_v61  ;;  %v3474_v58 = vld [vmem:[#allocation5 + $0x46c] ss:$16 sps:$4 sm:$0xff]  }
  0xe1   :  { %1878 = vmatprep.subr.bf16.mxu0 %v3397_v60  ;;  %v3477_v60 = vld [vmem:[#allocation5 + $0x48c] ss:$16 sps:$4 sm:$0xff]  }
  0xe2   :  { %v3570_v61 = vld [vmem:[#allocation7 + $0x34] ss:$8 sps:$4 sm:$0xff]  }
  0xe3   :  { %1961 = vmatpush1.bf16.msra.mxu1 %v3398_v0  ;;  %v3475_v0 = vld [vmem:[#allocation5 + $0x488] ss:$16 sps:$4 sm:$0xff]  }
  0xe4   :  { %1879 = vmatpush1.bf16.msra.mxu0 %v3395_v62  ;;  %1962 = vmatprep.subr.bf16.mxu1 %v3406_v2  ;;  %v3573_v62 = vld [vmem:[#allocation7 + $0x44] ss:$8 sps:$4 sm:$0xff]   ;;  %v3571_v2 = vld [vmem:[#allocation7 + $0x40] ss:$8 sps:$4 sm:$0xff]  }
  0xe5   :  { %1880 = vmatprep.subr.bf16.mxu0 %v3403_v1  ;;  %v3480_v1 = vld [vmem:[#allocation5 + $0x4ac] ss:$16 sps:$4 sm:$0xff]  }
  0xe7   :  { %1963 = vmatpush1.bf16.msra.mxu1 %v3404_v4  ;;  %v3478_v4 = vld [vmem:[#allocation5 + $0x4a8] ss:$16 sps:$4 sm:$0xff]  }
  0xe8   :  { %1881 = vmatpush1.bf16.msra.mxu0 %v3401_v3  ;;  %1964 = vmatprep.subr.bf16.mxu1 %v3412_v6  ;;  %v3576_v3 = vld [vmem:[#allocation7 + $0x54] ss:$8 sps:$4 sm:$0xff]   ;;  %v3574_v6 = vld [vmem:[#allocation7 + $0x50] ss:$8 sps:$4 sm:$0xff]  }
  0xe9   :  { %1882 = vmatprep.subr.bf16.mxu0 %v3409_v5  ;;  %v3483_v5 = vld [vmem:[#allocation5 + $0x4cc] ss:$16 sps:$4 sm:$0xff]  }
  0xeb   :  { %1965 = vmatpush1.bf16.msra.mxu1 %v3410_v8  ;;  %v3481_v8 = vld [vmem:[#allocation5 + $0x4c8] ss:$16 sps:$4 sm:$0xff]  }
  0xec   :  { %1883 = vmatpush1.bf16.msra.mxu0 %v3407_v7  ;;  %1966 = vmatprep.subr.bf16.mxu1 %v3418_v11  ;;  %v3579_v7 = vld [vmem:[#allocation7 + $0x64] ss:$8 sps:$4 sm:$0xff]   ;;  %v3577_v11 = vld [vmem:[#allocation7 + $0x60] ss:$8 sps:$4 sm:$0xff]  }
  0xed   :  { %1884 = vmatprep.subr.bf16.mxu0 %v3415_v10  ;;  %v3486_v10 = vld [vmem:[#allocation5 + $0x4ec] ss:$16 sps:$4 sm:$0xff]  }
  0xef   :  { %1967 = vmatpush1.bf16.msra.mxu1 %v3416_v13  ;;  %v3484_v13 = vld [vmem:[#allocation5 + $0x4e8] ss:$16 sps:$4 sm:$0xff]  }
  0xf0   :  { %1885 = vmatpush1.bf16.msra.mxu0 %v3413_v12  ;;  %1968 = vmatprep.subr.bf16.mxu1 %v3424_v15  ;;  %v3582_v12 = vld [vmem:[#allocation7 + $0x74] ss:$8 sps:$4 sm:$0xff]   ;;  %v3580_v15 = vld [vmem:[#allocation7 + $0x70] ss:$8 sps:$4 sm:$0xff]  }
  0xf1   :  { %1886 = vmatprep.subr.bf16.mxu0 %v3421_v14  ;;  %v3489_v14 = vld [vmem:[#allocation5 + $0x50c] ss:$16 sps:$4 sm:$0xff]  }
  0xf3   :  { %1969 = vmatpush1.bf16.msra.mxu1 %v3422_v17  ;;  %v3487_v17 = vld [vmem:[#allocation5 + $0x508] ss:$16 sps:$4 sm:$0xff]  }
  0xf4   :  { %1887 = vmatpush1.bf16.msra.mxu0 %v3419_v16  ;;  %1970 = vmatprep.subr.bf16.mxu1 %v3430_v19  ;;  %v3585_v16 = vld [vmem:[#allocation7 + $0x84] ss:$8 sps:$4 sm:$0xff]   ;;  %v3583_v19 = vld [vmem:[#allocation7 + $0x80] ss:$8 sps:$4 sm:$0xff]  }
  0xf5   :  { %1888 = vmatprep.subr.bf16.mxu0 %v3427_v18  ;;  %v3492_v18 = vld [vmem:[#allocation5 + $0x52c] ss:$16 sps:$4 sm:$0xff]  }
  0xf7   :  { %1971 = vmatpush1.bf16.msra.mxu1 %v3428_v21  ;;  %v3490_v21 = vld [vmem:[#allocation5 + $0x528] ss:$16 sps:$4 sm:$0xff]  }
  0xf8   :  { %1889 = vmatpush1.bf16.msra.mxu0 %v3425_v20  ;;  %1972 = vmatprep.subr.bf16.mxu1 %v3436_v24  ;;  %v3588_v20 = vld [vmem:[#allocation7 + $0x94] ss:$8 sps:$4 sm:$0xff]   ;;  %v3586_v24 = vld [vmem:[#allocation7 + $0x90] ss:$8 sps:$4 sm:$0xff]  }
  0xf9   :  { %1890 = vmatprep.subr.bf16.mxu0 %v3433_v23  ;;  %v3495_v23 = vld [vmem:[#allocation5 + $0x54c] ss:$16 sps:$4 sm:$0xff]  }
  0xfb   :  { %1973 = vmatpush1.bf16.msra.mxu1 %v3434_v27  ;;  %v3493_v27 = vld [vmem:[#allocation5 + $0x548] ss:$16 sps:$4 sm:$0xff]  }
  0xfc   :  { %1891 = vmatpush1.bf16.msra.mxu0 %v3431_v26  ;;  %1974 = vmatprep.subr.bf16.mxu1 %v3442_v29  ;;  %v3591_v26 = vld [vmem:[#allocation7 + $0xa4] ss:$8 sps:$4 sm:$0xff]   ;;  %v3589_v29 = vld [vmem:[#allocation7 + $0xa0] ss:$8 sps:$4 sm:$0xff]  }
  0xfd   :  { %1892 = vmatprep.subr.bf16.mxu0 %v3439_v28  ;;  %v3498_v28 = vld [vmem:[#allocation5 + $0x56c] ss:$16 sps:$4 sm:$0xff]  }
  0xff   :  { %1975 = vmatpush1.bf16.msra.mxu1 %v3440_v31  ;;  %v3496_v31 = vld [vmem:[#allocation5 + $0x568] ss:$16 sps:$4 sm:$0xff]  }
 0x100   :  { %1893 = vmatpush1.bf16.msra.mxu0 %v3437_v30  ;;  %1976 = vmatprep.subr.bf16.mxu1 %v3448_v33  ;;  %v3594_v30 = vld [vmem:[#allocation7 + $0xb4] ss:$8 sps:$4 sm:$0xff]   ;;  %v3592_v33 = vld [vmem:[#allocation7 + $0xb0] ss:$8 sps:$4 sm:$0xff]  }
 0x101   :  { %1894 = vmatprep.subr.bf16.mxu0 %v3445_v32  ;;  %v3501_v32 = vld [vmem:[#allocation5 + $0x58c] ss:$16 sps:$4 sm:$0xff]  }
 0x103   :  { %1977 = vmatpush1.bf16.msra.mxu1 %v3446_v35  ;;  %v3499_v35 = vld [vmem:[#allocation5 + $0x588] ss:$16 sps:$4 sm:$0xff]  }
 0x104   :  { %1895 = vmatpush1.bf16.msra.mxu0 %v3443_v34  ;;  %1978 = vmatprep.subr.bf16.mxu1 %v3454_v38  ;;  %v3597_v34 = vld [vmem:[#allocation7 + $0xc4] ss:$8 sps:$4 sm:$0xff]   ;;  %v3595_v38 = vld [vmem:[#allocation7 + $0xc0] ss:$8 sps:$4 sm:$0xff]  }
 0x105   :  { %1896 = vmatprep.subr.bf16.mxu0 %v3451_v37  ;;  %v3504_v37 = vld [vmem:[#allocation5 + $0x5ac] ss:$16 sps:$4 sm:$0xff]  }
 0x107   :  { %1979 = vmatpush1.bf16.msra.mxu1 %v3452_v40  ;;  %v3502_v40 = vld [vmem:[#allocation5 + $0x5a8] ss:$16 sps:$4 sm:$0xff]  }
 0x108   :  { %1897 = vmatpush1.bf16.msra.mxu0 %v3449_v39  ;;  %1980 = vmatprep.subr.bf16.mxu1 %v3460_v42  ;;  %v3600_v39 = vld [vmem:[#allocation7 + $0xd4] ss:$8 sps:$4 sm:$0xff]   ;;  %v3598_v42 = vld [vmem:[#allocation7 + $0xd0] ss:$8 sps:$4 sm:$0xff]  }
 0x109   :  { %1898 = vmatprep.subr.bf16.mxu0 %v3457_v41  ;;  %v3507_v41 = vld [vmem:[#allocation5 + $0x5cc] ss:$16 sps:$4 sm:$0xff]  }
 0x10b   :  { %1981 = vmatpush1.bf16.msra.mxu1 %v3458_v45  ;;  %v3508_v45 = vld [vmem:[#allocation5 + $0x5e8] ss:$16 sps:$4 sm:$0xff]  }
 0x10c   :  { %1899 = vmatpush1.bf16.msra.mxu0 %v3455_v43  ;;  %1991 = vmatprep.subr.bf16.mxu1 %v3465_v47  ;;  %v3505_v43 = vld [vmem:[#allocation5 + $0x5c8] ss:$16 sps:$4 sm:$0xff]   ;;  %v3513_v47 = vld [vmem:[#allocation5 + $0x60c] ss:$16 sps:$4 sm:$0xff]  }
 0x10d   :  { %2477 = vmatprep.subr.bf16.mxu0 %v3561_v54  ;;  %v3519_v54 = vld [vmem:[#allocation5 + $0x64c] ss:$16 sps:$4 sm:$0xff]  }
 0x10e   :  { %1983 = vmatmul.mubr.bf16.vlgmr.msra.gmra.mrb[4].mxu1 %v3913_v25  ;;  %v3565_v25 = vld [vmem:[#allocation7 + $0x20] ss:$8 sps:$4 sm:$0xff]  }
 0x10f   :  { %1901 = vmatmul.mubr.bf16.vlgmr.msra.gmra.mrb[0].mxu0 %v3948_v50  ;;  %1992 = vmatpush1.bf16.msra.mxu1 %v3463_v49  ;;  %v3511_v49 = vld [vmem:[#allocation5 + $0x608] ss:$16 sps:$4 sm:$0xff]  }
 0x110   :  { %2023 = vmatprep.mubr.bf16.mxu1 %v3925_v63  ;;  %1993 = vmatprep.subr.bf16.mxu1 %v3468_v22  ;;  %v3568_v63 = vld [vmem:[#allocation7 + $0x30] ss:$8 sps:$4 sm:$0xff]   ;;  %v3516_v22 = vld [vmem:[#allocation5 + $0x62c] ss:$16 sps:$4 sm:$0xff]  }
 0x111   :  { %2478 = vmatpush1.bf16.msra.mxu0 %v3559_v52  ;;  %v3514_v52 = vld [vmem:[#allocation5 + $0x628] ss:$16 sps:$4 sm:$0xff]  }
 0x112   :  { %2479 = vmatprep.subr.bf16.mxu0 %v3564_v51  ;;  %v3522_v51 = vld [vmem:[#allocation5 + $0x66c] ss:$16 sps:$4 sm:$0xff]  }
 0x113   :  { %1994 = vmatpush1.bf16.msra.mxu1 %v3466_v48  ;;  %v3517_v48 = vld [vmem:[#allocation5 + $0x648] ss:$16 sps:$4 sm:$0xff]  }
 0x114   :  { %1995 = vmatprep.subr.bf16.mxu1 %v3471_v55  ;;  %v3520_v55 = vld [vmem:[#allocation5 + $0x668] ss:$16 sps:$4 sm:$0xff]  }
 0x115   :  { %2480 = vmatpush1.bf16.msra.mxu0 %v3562_v56  ;;  %v3525_v56 = vld [vmem:[#allocation5 + $0x68c] ss:$16 sps:$4 sm:$0xff]  }
 0x116   :  { %2481 = vmatprep.subr.bf16.mxu0 %v3567_v9  ;;  %v3523_v9 = vld [vmem:[#allocation5 + $0x688] ss:$16 sps:$4 sm:$0xff]  }
 0x117   :  { %1996 = vmatpush1.bf16.msra.mxu1 %v3469_v53  ;;  %v3528_v53 = vld [vmem:[#allocation5 + $0x6ac] ss:$16 sps:$4 sm:$0xff]  }
 0x118   :  { %1997 = vmatprep.subr.bf16.mxu1 %v3474_v58  ;;  %v3531_v58 = vld [vmem:[#allocation5 + $0x6cc] ss:$16 sps:$4 sm:$0xff]  }
 0x119   :  { %2482 = vmatpush1.bf16.msra.mxu0 %v3565_v25  ;;  %v3603_v25 = vld [vmem:[#allocation7 + $0xe4] ss:$8 sps:$4 sm:$0xff]  }
 0x11a   :  { %2483 = vmatprep.subr.bf16.mxu0 %v3570_v61 }
 0x11b   :  { %1998 = vmatpush1.bf16.msra.mxu1 %v3472_v59  ;;  %v3601_v59 = vld [vmem:[#allocation7 + $0xe0] ss:$8 sps:$4 sm:$0xff]  }
 0x11c   :  { %1999 = vmatprep.subr.bf16.mxu1 %v3477_v60 }
 0x11d   :  { %2484 = vmatpush1.bf16.msra.mxu0 %v3568_v63  ;;  %v3529_v63 = vld [vmem:[#allocation5 + $0x6c8] ss:$16 sps:$4 sm:$0xff]  }
 0x11e   :  { %2485 = vmatprep.subr.bf16.mxu0 %v3573_v62 }
 0x11f   :  { %2000 = vmatpush1.bf16.msra.mxu1 %v3475_v0  ;;  %v3534_v0 = vld [vmem:[#allocation5 + $0x6ec] ss:$16 sps:$4 sm:$0xff]  }
 0x120   :  { %2001 = vmatprep.subr.bf16.mxu1 %v3480_v1  ;;  %v3606_v1 = vld [vmem:[#allocation7 + $0xf4] ss:$8 sps:$4 sm:$0xff]  }
 0x121   :  { %2486 = vmatpush1.bf16.msra.mxu0 %v3571_v2  ;;  %v3604_v2 = vld [vmem:[#allocation7 + $0xf0] ss:$8 sps:$4 sm:$0xff]  }
 0x122   :  { %2487 = vmatprep.subr.bf16.mxu0 %v3576_v3  ;;  %v3532_v3 = vld [vmem:[#allocation5 + $0x6e8] ss:$16 sps:$4 sm:$0xff]  }
 0x123   :  { %2002 = vmatpush1.bf16.msra.mxu1 %v3478_v4  ;;  %v3537_v4 = vld [vmem:[#allocation5 + $0x70c] ss:$16 sps:$4 sm:$0xff]  }
 0x124   :  { %2003 = vmatprep.subr.bf16.mxu1 %v3483_v5  ;;  %v3609_v5 = vld [vmem:[#allocation7 + $0x104] ss:$8 sps:$4 sm:$0xff]  }
 0x125   :  { %2488 = vmatpush1.bf16.msra.mxu0 %v3574_v6  ;;  %v3535_v6 = vld [vmem:[#allocation5 + $0x708] ss:$16 sps:$4 sm:$0xff]  }
 0x126   :  { %2489 = vmatprep.subr.bf16.mxu0 %v3579_v7  ;;  %v3540_v7 = vld [vmem:[#allocation5 + $0x72c] ss:$16 sps:$4 sm:$0xff]  }
 0x127   :  { %2004 = vmatpush1.bf16.msra.mxu1 %v3481_v8  ;;  %v3538_v8 = vld [vmem:[#allocation5 + $0x728] ss:$16 sps:$4 sm:$0xff]  }
 0x128   :  { %2005 = vmatprep.subr.bf16.mxu1 %v3486_v10  ;;  %v3543_v10 = vld [vmem:[#allocation5 + $0x74c] ss:$16 sps:$4 sm:$0xff]  }
 0x129   :  { %2490 = vmatpush1.bf16.msra.mxu0 %v3577_v11  ;;  %v3541_v11 = vld [vmem:[#allocation5 + $0x748] ss:$16 sps:$4 sm:$0xff]  }
 0x12a   :  { %2491 = vmatprep.subr.bf16.mxu0 %v3582_v12  ;;  %v3546_v12 = vld [vmem:[#allocation5 + $0x76c] ss:$16 sps:$4 sm:$0xff]  }
 0x12b   :  { %2006 = vmatpush1.bf16.msra.mxu1 %v3484_v13  ;;  %v3544_v13 = vld [vmem:[#allocation5 + $0x768] ss:$16 sps:$4 sm:$0xff]  }
 0x12c   :  { %2007 = vmatprep.subr.bf16.mxu1 %v3489_v14  ;;  %v3549_v14 = vld [vmem:[#allocation5 + $0x78c] ss:$16 sps:$4 sm:$0xff]  }
 0x12d   :  { %2492 = vmatpush1.bf16.msra.mxu0 %v3580_v15  ;;  %v3547_v15 = vld [vmem:[#allocation5 + $0x788] ss:$16 sps:$4 sm:$0xff]  }
 0x12e   :  { %2493 = vmatprep.subr.bf16.mxu0 %v3585_v16  ;;  %v3552_v16 = vld [vmem:[#allocation5 + $0x7ac] ss:$16 sps:$4 sm:$0xff]  }
 0x12f   :  { %2008 = vmatpush1.bf16.msra.mxu1 %v3487_v17  ;;  %v3550_v17 = vld [vmem:[#allocation5 + $0x7a8] ss:$16 sps:$4 sm:$0xff]  }
 0x130   :  { %2009 = vmatprep.subr.bf16.mxu1 %v3492_v18  ;;  %v3555_v18 = vld [vmem:[#allocation5 + $0x7cc] ss:$16 sps:$4 sm:$0xff]  }
 0x131   :  { %2494 = vmatpush1.bf16.msra.mxu0 %v3583_v19  ;;  %v3553_v19 = vld [vmem:[#allocation5 + $0x7c8] ss:$16 sps:$4 sm:$0xff]  }
 0x132   :  { %2495 = vmatprep.subr.bf16.mxu0 %v3588_v20  ;;  %v3558_v20 = vld [vmem:[#allocation5 + $0x7ec] ss:$16 sps:$4 sm:$0xff]  }
 0x133   :  { %2010 = vmatpush1.bf16.msra.mxu1 %v3490_v21  ;;  %v3556_v21 = vld [vmem:[#allocation5 + $0x7e8] ss:$16 sps:$4 sm:$0xff]  }
 0x134   :  { %2011 = vmatprep.subr.bf16.mxu1 %v3495_v23  ;;  %v447_v23 = vsub.s32 0, %v3899_v46 }
 0x135   :  { %2496 = vmatpush1.bf16.msra.mxu0 %v3586_v24  ;;  %v3960_v24 = vld [vmem:[%s3997_s2] sm:$0xf] }
 0x136   :  { %2497 = vmatprep.subr.bf16.mxu0 %v3591_v26  ;;  %v451_v26 = vsub.s32 1, %v3899_v46 }
 0x137   :  { %2012 = vmatpush1.bf16.msra.mxu1 %v3493_v27  ;;  %v448_v27 = vrot.slane %v3960_v24, %v447_v23 }
 0x138   :  { %2013 = vmatprep.subr.bf16.mxu1 %v3498_v28  ;;  %v452_v28 = vrot.slane %v3960_v24, %v451_v26 }
 0x139   :  { %2498 = vmatpush1.bf16.msra.mxu0 %v3589_v29 }
 0x13a   :  { %2499 = vmatprep.subr.bf16.mxu0 %v3594_v30 }
 0x13b   :  { %2014 = vmatpush1.bf16.msra.mxu1 %v3496_v31 }
 0x13c   :  { %2015 = vmatprep.subr.bf16.mxu1 %v3501_v32 }
 0x13d   :  { %2500 = vmatpush1.bf16.msra.mxu0 %v3592_v33 }
 0x13e   :  { %2501 = vmatprep.subr.bf16.mxu0 %v3597_v34 }
 0x13f   :  { %2016 = vmatpush1.bf16.msra.mxu1 %v3499_v35 }
 0x140   :  { %2017 = vmatprep.subr.bf16.mxu1 %v3504_v37 }
 0x141   :  { %2502 = vmatpush1.bf16.msra.mxu0 %v3595_v38 }
 0x142   :  { %2503 = vmatprep.subr.bf16.mxu0 %v3600_v39 }
 0x143   :  { %2018 = vmatpush1.bf16.msra.mxu1 %v3502_v40  ;;  %v3607_v40 = vld [vmem:[#allocation7 + $0x100] ss:$8 sps:$4 sm:$0xff]  }
 0x144   :  { %2019 = vmatprep.subr.bf16.mxu1 %v3507_v41 }
 0x145   :  { %2504 = vmatpush1.bf16.msra.mxu0 %v3598_v42  ;;  %v3612_v42 = vld [vmem:[#allocation7 + $0x114] ss:$8 sps:$4 sm:$0xff]  }
 0x146   :  { %2505 = vmatprep.subr.bf16.mxu0 %v3603_v25  ;;  %v3624_v25 = vld [vmem:[#allocation7 + $0x154] ss:$8 sps:$4 sm:$0xff]  }
 0x147   :  { %2020 = vmatpush1.bf16.msra.mxu1 %v3505_v43  ;;  %v3655_v43 = vld [vmem:[#allocation8 + $0x40] sm:$0xff]  }
 0x148   :  { %2021 = vmatprep.subr.bf16.mxu1 %v3510_v44  ;;  %v3656_v44 = vld [vmem:[#allocation8] sm:$0xff]  }
 0x149   :  { %2506 = vmatpush1.bf16.msra.mxu0 %v3601_v59  ;;  %v3665_v59 = vld [vmem:[#allocation8 + $0x68] sm:$0xff]  }
 0x14a   :  { %2507 = vmatprep.subr.bf16.mxu0 %v3606_v1  ;;  %v3628_v1 = vld [vmem:[#allocation7 + $0x170] ss:$8 sps:$4 sm:$0xff]  }
 0x14b   :  { %2022 = vmatpush1.bf16.msra.mxu1 %v3508_v45  ;;  %v3657_v45 = vld [vmem:[#allocation8 + $0x48] sm:$0xff]  }
 0x14c   :  { %2032 = vmatprep.subr.bf16.mxu1 %v3513_v47  ;;  %v3610_v47 = vld [vmem:[#allocation7 + $0x110] ss:$8 sps:$4 sm:$0xff]  }
 0x14d   :  { %2508 = vmatpush1.bf16.msra.mxu0 %v3604_v2  ;;  %v3633_v2 = vld [vmem:[#allocation7 + $0x184] ss:$8 sps:$4 sm:$0xff]  }
 0x14e   :  { %2024 = vmatmul.mubr.bf16.vlgmr.msra.gmra.mrb[4].mxu1 %v3930_v36  ;;  %v3526_v36 = vld [vmem:[#allocation5 + $0x6a8] ss:$16 sps:$4 sm:$0xff]   ;;  %2518 = vmatprep.subr.bf16.mxu0 %v3609_v5 }
 0x14f   :  { %2033 = vmatpush1.bf16.msra.mxu1 %v3511_v49  ;;  %2064 = vmatprep.mubr.bf16.mxu1 %v3943_v57  ;;  %v3615_v49 = vld [vmem:[#allocation7 + $0x124] ss:$8 sps:$4 sm:$0xff]   ;;  %v3634_v5 = vld [vmem:[#allocation7 + $0x190] ss:$8 sps:$4 sm:$0xff]  }
 0x150   :  { %2034 = vmatprep.subr.bf16.mxu1 %v3516_v22  ;;  %v3658_v22 = vld [vmem:[#allocation8 + $0x8] sm:$0xff]  }
 0x153   :  { %2035 = vmatpush1.bf16.msra.mxu1 %v3514_v52  ;;  %v3659_v52 = vld [vmem:[#allocation8 + $0x50] sm:$0xff]  }
 0x154   :  { %2036 = vmatprep.subr.bf16.mxu1 %v3519_v54  ;;  %v3613_v54 = vld [vmem:[#allocation7 + $0x120] ss:$8 sps:$4 sm:$0xff]  }
 0x157   :  { %2037 = vmatpush1.bf16.msra.mxu1 %v3517_v48  ;;  %v3618_v48 = vld [vmem:[#allocation7 + $0x134] ss:$8 sps:$4 sm:$0xff]  }
 0x158   :  { %2038 = vmatprep.subr.bf16.mxu1 %v3522_v51  ;;  %v3660_v51 = vld [vmem:[#allocation8 + $0x10] sm:$0xff]  }
 0x15b   :  { %2039 = vmatpush1.bf16.msra.mxu1 %v3520_v55  ;;  %v3661_v55 = vld [vmem:[#allocation8 + $0x58] sm:$0xff]  }
 0x15c   :  { %2040 = vmatprep.subr.bf16.mxu1 %v3525_v56  ;;  %v3616_v56 = vld [vmem:[#allocation7 + $0x130] ss:$8 sps:$4 sm:$0xff]  }
 0x15f   :  { %2041 = vmatpush1.bf16.msra.mxu1 %v3523_v9  ;;  %v3621_v9 = vld [vmem:[#allocation7 + $0x144] ss:$8 sps:$4 sm:$0xff]  }
 0x160   :  { %2042 = vmatprep.subr.bf16.mxu1 %v3528_v53  ;;  %v3662_v53 = vld [vmem:[#allocation8 + $0x18] sm:$0xff]  }
 0x161   :  { %v1779_v57 = vpop.f32.mrb[0].mxu1 }
 0x162   :  { %v1781_v60 = vpop.f32.mrb[1].mxu1  ;;  %v1780_v29 = vadd.f32 %v1779_v57, %v448_v27  ;;  %v3664_v57 = vld [vmem:[#allocation8 + $0x20] sm:$0xff]  }
 0x163   :  { %v1783_v61 = vpop.f32.mrb[2].mxu1  ;;  %2043 = vmatpush1.bf16.msra.mxu1 %v3526_v36  ;;  %v1782_v30 = vadd.f32 %v1781_v60, %v452_v28  ;;  %v3663_v36 = vld [vmem:[#allocation8 + $0x60] sm:$0xff]   ;;  %v3622_v60 = vld [vmem:[#allocation7 + $0x150] ss:$8 sps:$4 sm:$0xff]  }
 0x164   :  { %v1784_v62 = vpop.f32.mrb[3].mxu1  ;;  %2044 = vmatprep.subr.bf16.mxu1 %v3531_v58  ;;  %v3619_v58 = vld [vmem:[#allocation7 + $0x140] ss:$8 sps:$4 sm:$0xff]   ;;  %v3627_v61 = vld [vmem:[#allocation7 + $0x164] ss:$8 sps:$4 sm:$0xff]  }
 0x165   :  { %v3625_v62 = vld [vmem:[#allocation7 + $0x160] ss:$8 sps:$4 sm:$0xff]  }
 0x167   :  { %2045 = vmatpush1.bf16.msra.mxu1 %v3529_v63  ;;  %v3666_v63 = vld [vmem:[#allocation8 + $0x28] sm:$0xff]  }
 0x168   :  { %2046 = vmatprep.subr.bf16.mxu1 %v3534_v0  ;;  %v3630_v0 = vld [vmem:[#allocation7 + $0x174] ss:$8 sps:$4 sm:$0xff]  }
 0x16b   :  { %2047 = vmatpush1.bf16.msra.mxu1 %v3532_v3  ;;  %v3631_v3 = vld [vmem:[#allocation7 + $0x180] ss:$8 sps:$4 sm:$0xff]  }
 0x16c   :  { %2048 = vmatprep.subr.bf16.mxu1 %v3537_v4  ;;  %v3636_v4 = vld [vmem:[#allocation7 + $0x194] ss:$8 sps:$4 sm:$0xff]  }
 0x16f   :  { %2049 = vmatpush1.bf16.msra.mxu1 %v3535_v6  ;;  %v3639_v6 = vld [vmem:[#allocation7 + $0x1a4] ss:$8 sps:$4 sm:$0xff]  }
 0x170   :  { %2050 = vmatprep.subr.bf16.mxu1 %v3540_v7  ;;  %v3637_v7 = vld [vmem:[#allocation7 + $0x1a0] ss:$8 sps:$4 sm:$0xff]  }
 0x173   :  { %2051 = vmatpush1.bf16.msra.mxu1 %v3538_v8  ;;  %v3642_v8 = vld [vmem:[#allocation7 + $0x1b4] ss:$8 sps:$4 sm:$0xff]  }
 0x174   :  { %2052 = vmatprep.subr.bf16.mxu1 %v3543_v10  ;;  %v3640_v10 = vld [vmem:[#allocation7 + $0x1b0] ss:$8 sps:$4 sm:$0xff]  }
 0x177   :  { %2053 = vmatpush1.bf16.msra.mxu1 %v3541_v11  ;;  %v3645_v11 = vld [vmem:[#allocation7 + $0x1c4] ss:$8 sps:$4 sm:$0xff]  }
 0x178   :  { %2054 = vmatprep.subr.bf16.mxu1 %v3546_v12  ;;  %v3643_v12 = vld [vmem:[#allocation7 + $0x1c0] ss:$8 sps:$4 sm:$0xff]  }
 0x17b   :  { %2055 = vmatpush1.bf16.msra.mxu1 %v3544_v13  ;;  %v3648_v13 = vld [vmem:[#allocation7 + $0x1d4] ss:$8 sps:$4 sm:$0xff]  }
 0x17c   :  { %2056 = vmatprep.subr.bf16.mxu1 %v3549_v14  ;;  %v3646_v14 = vld [vmem:[#allocation7 + $0x1d0] ss:$8 sps:$4 sm:$0xff]  }
 0x17f   :  { %2057 = vmatpush1.bf16.msra.mxu1 %v3547_v15  ;;  %v3651_v15 = vld [vmem:[#allocation7 + $0x1e4] ss:$8 sps:$4 sm:$0xff]  }
 0x180   :  { %2058 = vmatprep.subr.bf16.mxu1 %v3552_v16  ;;  %v3649_v16 = vld [vmem:[#allocation7 + $0x1e0] ss:$8 sps:$4 sm:$0xff]  }
 0x183   :  { %2059 = vmatpush1.bf16.msra.mxu1 %v3550_v17  ;;  %v3654_v17 = vld [vmem:[#allocation7 + $0x1f4] ss:$8 sps:$4 sm:$0xff]  }
 0x184   :  { %2060 = vmatprep.subr.bf16.mxu1 %v3555_v18  ;;  %v3652_v18 = vld [vmem:[#allocation7 + $0x1f0] ss:$8 sps:$4 sm:$0xff]  }
 0x187   :  { %2061 = vmatpush1.bf16.msra.mxu1 %v3553_v19  ;;  %v455_v19 = vsub.s32 2, %v3899_v46 }
 0x188   :  { %2062 = vmatprep.subr.bf16.mxu1 %v3558_v20  ;;  %v459_v20 = vsub.s32 3, %v3899_v46 }
 0x18a   :  { %v460_v27 = vrot.slane %v3960_v24, %v459_v20 }
 0x18b   :  { %2063 = vmatpush1.bf16.msra.mxu1 %v3556_v21  ;;  %v456_v21 = vrot.slane %v3960_v24, %v455_v19  ;;  %v2145_v24 = vld [vmem:[%s3999_s4] sm:$0x3] }
 0x18c   :  { %3095 = vmatprep.subr.bf16.mxu1 %v3655_v43  ;;  %v2154_v43 = vrot.slane %v2145_v24, %v451_v26 }
 0x18e   :  { %2065 = vmatmul.mubr.bf16.vlgmr.msra.gmra.mrb[4].mxu1 %v3948_v50 }
 0x18f   :  { %3096 = vmatpush3.bf16.msra.mxu1 %v3656_v44 }
 0x190   :  { %3097 = vmatprep.subr.bf16.mxu1 %v3657_v45 }
 0x193   :  { %3098 = vmatpush3.bf16.msra.mxu1 %v3658_v22 }
 0x194   :  { %3099 = vmatprep.subr.bf16.mxu1 %v3659_v52 }
 0x197   :  { %3100 = vmatpush3.bf16.msra.mxu1 %v3660_v51 }
 0x198   :  { %3101 = vmatprep.subr.bf16.mxu1 %v3661_v55 }
 0x19b   :  { %3102 = vmatpush3.bf16.msra.mxu1 %v3662_v53 }
 0x19c   :  { %3103 = vmatprep.subr.bf16.mxu1 %v3663_v36 }
 0x19f   :  { %3104 = vmatpush3.bf16.msra.mxu1 %v3664_v57 }
 0x1a0   :  { %3105 = vmatprep.subr.bf16.mxu1 %v3665_v59 }
 0x1a3   :  { %3106 = vmatpush3.bf16.msra.mxu1 %v3666_v63 }
 0x1e2   :  { %v1902_v50 = vpop.f32.mrb[0].mxu0 }
 0x1e3   :  { %v3118_v31 = vadd.f32 %v1902_v50, %v1780_v29  ;;  %v1904_v32 = vpop.f32.mrb[1].mxu0 }
 0x1e4   :  { %v3120_v33 = vadd.f32 %v1904_v32, %v1782_v30  ;;  %v1906_v34 = vpop.f32.mrb[2].mxu0 }
 0x1e5   :  { %v2073_v35 = vmax.f32 %v3118_v31, 0.0  ;;  %v1907_v37 = vpop.f32.mrb[3].mxu0 }
 0x1e6   :  { %v2074_v38 = vmax.f32 %v3120_v33, 0.0 }
 0x1e7   :  { %v2077_v41 = vpack.c.bf16 %v2073_v35, %v2073_v35 }
 0x1e8   :  { %v2078_v39 = vpack.c.bf16 %v2074_v38, %v2074_v38  ;;  %v3667_v38 = vld [vmem:[#allocation8 + $0x70] sm:$0xff]  }
 0x1e9   :  { %3107 = vmatprep.subr.bf16.mxu1 %v3667_v38 }
 0x1ea   :  { %2509 = vmatprep.mubr.bf16.mxu0 %v2078_v39  ;;  %v3668_v39 = vld [vmem:[#allocation8 + $0x30] sm:$0xff]  }
 0x1eb   :  { %2510 = vmatmul.mubr.bf16.vlgmr.msra.gmra.mrb[4].mxu0 %v2077_v41  ;;  %3108 = vmatpush3.bf16.msra.mxu1 %v3668_v39  ;;  %v3670_v41 = vld [vmem:[#allocation8 + $0x38] sm:$0xff]  }
 0x1ec   :  { %2519 = vmatpush1.bf16.msra.mxu0 %v3607_v40  ;;  %v3669_v40 = vld [vmem:[#allocation8 + $0x78] sm:$0xff]  }
 0x1ed   :  { %2520 = vmatprep.subr.bf16.mxu0 %v3612_v42  ;;  %3109 = vmatprep.subr.bf16.mxu1 %v3669_v40  ;;  %v2150_v42 = vrot.slane %v2145_v24, %v447_v23  ;;  %v3078_v23 = vld [vmem:[%s4001_s6] ss:$0 sm:$0xff] }
 0x1ef   :  { %3110 = vmatpush3.bf16.msra.mxu1 %v3670_v41 }
 0x1f0   :  { %2521 = vmatpush1.bf16.msra.mxu0 %v3610_v47 }
 0x1f1   :  { %2522 = vmatprep.subr.bf16.mxu0 %v3615_v49 }
 0x1f4   :  { %2523 = vmatpush1.bf16.msra.mxu0 %v3613_v54 }
 0x1f5   :  { %2524 = vmatprep.subr.bf16.mxu0 %v3618_v48 }
 0x1f8   :  { %2525 = vmatpush1.bf16.msra.mxu0 %v3616_v56 }
 0x1f9   :  { %2526 = vmatprep.subr.bf16.mxu0 %v3621_v9 }
 0x1fc   :  { %2527 = vmatpush1.bf16.msra.mxu0 %v3619_v58 }
 0x1fd   :  { %2528 = vmatprep.subr.bf16.mxu0 %v3624_v25 }
 0x200   :  { %2529 = vmatpush1.bf16.msra.mxu0 %v3622_v60 }
 0x201   :  { %2530 = vmatprep.subr.bf16.mxu0 %v3627_v61 }
 0x204   :  { %2531 = vmatpush1.bf16.msra.mxu0 %v3625_v62 }
 0x205   :  { %2532 = vmatprep.subr.bf16.mxu0 %v3630_v0 }
 0x208   :  { %2533 = vmatpush1.bf16.msra.mxu0 %v3628_v1 }
 0x209   :  { %2534 = vmatprep.subr.bf16.mxu0 %v3633_v2 }
 0x20c   :  { %2535 = vmatpush1.bf16.msra.mxu0 %v3631_v3 }
 0x20d   :  { %2536 = vmatprep.subr.bf16.mxu0 %v3636_v4 }
 0x210   :  { %2537 = vmatpush1.bf16.msra.mxu0 %v3634_v5 }
 0x211   :  { %2538 = vmatprep.subr.bf16.mxu0 %v3639_v6 }
 0x214   :  { %2539 = vmatpush1.bf16.msra.mxu0 %v3637_v7 }
 0x215   :  { %2540 = vmatprep.subr.bf16.mxu0 %v3642_v8 }
 0x218   :  { %2541 = vmatpush1.bf16.msra.mxu0 %v3640_v10 }
 0x219   :  { %2542 = vmatprep.subr.bf16.mxu0 %v3645_v11 }
 0x21c   :  { %2543 = vmatpush1.bf16.msra.mxu0 %v3643_v12 }
 0x21d   :  { %2544 = vmatprep.subr.bf16.mxu0 %v3648_v13 }
 0x220   :  { %2545 = vmatpush1.bf16.msra.mxu0 %v3646_v14 }
 0x221   :  { %2546 = vmatprep.subr.bf16.mxu0 %v3651_v15 }
 0x224   :  { %2547 = vmatpush1.bf16.msra.mxu0 %v3649_v16 }
 0x225   :  { %2548 = vmatprep.subr.bf16.mxu0 %v3654_v17 }
 0x228   :  { %2549 = vmatpush1.bf16.msra.mxu0 %v3652_v18 }
 0x261   :  { %v2066_v28 = vpop.f32.mrb[4].mxu1 }
 0x262   :  { %v3121_v29 = vadd.f32 %v2066_v28, %v456_v21  ;;  %v2068_v30 = vpop.f32.mrb[5].mxu1 }
 0x263   :  { %v3122_v50 = vadd.f32 %v2068_v30, %v460_v27  ;;  %v2070_v31 = vpop.f32.mrb[6].mxu1 }
 0x264   :  { %v2075_v32 = vmax.f32 %v3121_v29, 0.0  ;;  %v2071_v33 = vpop.f32.mrb[7].mxu1 }
 0x265   :  { %v2076_v34 = vmax.f32 %v3122_v50, 0.0 }
 0x266   :  { %v2079_v37 = vpack.c.bf16 %v2075_v32, %v2075_v32 }
 0x267   :  { %v2080_v35 = vpack.c.bf16 %v2076_v34, %v2076_v34 }
 0x269   :  { %2550 = vmatprep.mubr.bf16.mxu0 %v2080_v35 }
 0x26a   :  { %2551 = vmatmul.mubr.bf16.vlgmr.msra.gmra.mrb[4].mxu0 %v2079_v37 }
 0x33d   :  { %v2552_v44 = vpop.f32.mrb[4].mxu0 }
 0x33e   :  { %v3123_v45 = vadd.f32 %v2552_v44, %v2150_v42  ;;  %v2554_v47 = vpop.f32.mrb[5].mxu0 }
 0x33f   :  { %v3124_v49 = vadd.f32 %v2554_v47, %v2154_v43  ;;  %v2556_v22 = vpop.f32.mrb[6].mxu0 }
 0x340   :  { %v2559_v52 = vmax.f32 %v3123_v45, 0.0  ;;  %v2557_v54 = vpop.f32.mrb[7].mxu0 }
 0x341   :  { %v2560_v48 = vmax.f32 %v3124_v49, 0.0 }
 0x342   :  { %v2561_v55 = vpack.c.bf16 %v2559_v52, %v2559_v52 }
 0x343   :  { %v2562_v51 = vpack.c.bf16 %v2560_v48, %v2560_v48 }
 0x345   :  { %2730 = vmatprep.mubr.bf16.mxu1 %v2562_v51 }
 0x346   :  { %2731 = vmatmul.mubr.bf16.vlgmr.msra.gmra.mrb[8].mxu1 %v2561_v55 }
 0x419   :  { %v3111_v56 = vpop.f32.mrb[8].mxu1 }
 0x41a   :  { %v3112_v9 = vpop.f32.mrb[9].mxu1 }
 0x41b   :  { %v3113_v46 = vadd.f32 %v3112_v9, %v3111_v56  ;;  %v3114_v26 = vpop.f32.mrb[10].mxu1 }
 0x41c   :  { %v3115_v53 = vpop.f32.mrb[11].mxu1 }
 0x41d   :  { %v2733_v36 = vadd.f32 %v3113_v46, %v3078_v23 }
 0x41f   :  { %2738 = vst [vmem:[#allocation10] sm:$0xff] %v2733_v36 }
 0x420   :  { %2743 = vsyncadd [#allocation4], 96  ;;  %s3800_s10 = smov [#allocation10]  }
 0x421   :  { %s2744_s11 = sshll.u32 %s3800_s10, 4  ;;  %s2745_s11 = int_to_ptr.vmem [resolvable:$true] %s2744_s11 }
 0x422   :  { %s3759_s12 = scalar_lea.vmem %s2745_s11, 32  ;;  %s3763_s15 = scalar_lea.vmem %s2745_s11, 128 }
 0x423   :  { %p3760_p4 = scmp.ne.s32.totalorder %s2745_s11, %s3759_s12  ;;  %p3764_p5 = scmp.lt.s32.totalorder %s2745_s11, %s2745_s11 }
 0x424   :  { %p3765_p6 = scmp.lt.s32.totalorder %s3763_s15, %s3759_s12 }
 0x426   :  { %p3766_p7 = por %p3765_p6, %p3764_p5 }
 0x428   :  { %p3767_p8 = pnand %p3766_p7, %p3760_p4 }
 0x42a   :  { %3770 = shalt.err (!%p3767_p8)
}
 0x42b   :  { %s3771_s0 = scalar_lea.hbm %s4002_s7, 32 }
 0x42c   :  { %p3772_p9 = scmp.ne.s32.totalorder %s4002_s7, %s3771_s0  ;;  %p3775_p10 = scmp.lt.u32.totalorder %s3771_s0, %s4002_s7 }
 0x42e   :  { %p3777_p11 = pnand %p3775_p10, %p3772_p9 }
 0x430   :  { %3780 = shalt.err (!%p3777_p11)
}
 0x431   :  { %s3801_s18 = smov 32   ;;  %s3802_s19 = smov 2  }
 0x432   :  { %2750 = dma.vmem_to_hbm [thread:$0]  %s2745_s11, 32, %s4002_s7, [#allocation4], %s3801_s18, %s3801_s18, %s3802_s19  }
 0x433   :  { %3787 = dma.done.wait [#allocation4], 128  }
 0x434   :  { %3788 = vsyncadd [#allocation4], 4294967168 }
 0x435   :  { %2754 = vsyncpa [#allocation3], 1 }
 0x436   :  { %2755 = vsyncpa [#allocation6], 1 }
 0x437   :  { %2756 = vsyncpa [#allocation9], 1 }
 0x438   :  { %2757 = vsyncpa [#allocation4], 1 }

</bundles_post_ra>
